<compile_context>
chip_gen: v6e
topology: v6e:2x2x1
jax: 0.10.0
libtpu: 0.0.40
codegen_flags: <defaults>
</compile_context>

<pallas_src>
import functools

import jax
import jax.numpy as jnp
from jax.experimental import pallas as pl
from jax.experimental.pallas import tpu as pltpu


_LANE = 128
_MAX_PACKED_LANES = 1024  # cap on the packed contraction length (keeps MXU work small)


# --------------------------------------------------------------------------- #
# Kernel body: one matmul against a constant 0/1 replication matrix.
# Every output element is an exact copy of one input element.
# --------------------------------------------------------------------------- #
def _dup_matmul_kernel(x_ref, rep_ref, o_ref, *, precision):
    o_ref[...] = jnp.dot(
        x_ref[...],
        rep_ref[...],
        preferred_element_type=jnp.float32,
        precision=precision,
    ).astype(o_ref.dtype)


# --------------------------------------------------------------------------- #
# Replication matrices.
# --------------------------------------------------------------------------- #
def _packed_rep(p, w, dtype):
    """(p*w, 4*p*w) matrix: input lane j*w+w' -> output lanes (2j+a)*2w + 2w'+b."""
    kw = p * w
    r = jnp.arange(kw, dtype=jnp.int32)
    c = jnp.arange(4 * kw, dtype=jnp.int32)
    rj, rw = r // w, r % w
    cj = c // (4 * w)
    cw_ = (c % (2 * w)) // 2
    rep = (rj[:, None] == cj[None, :]) & (rw[:, None] == cw_[None, :])
    return rep.astype(dtype)


def _lane_rep(cw, dtype):
    """(cw, 2*cw) matrix: lane duplication only (y[2w+b] = x[w])."""
    return (
        jnp.arange(2 * cw, dtype=jnp.int32) // 2
        == jnp.arange(cw, dtype=jnp.int32)[:, None]
    ).astype(dtype)


# --------------------------------------------------------------------------- #
# Tiling helpers.
# --------------------------------------------------------------------------- #
def _vmem_capacity_bytes() -> int:
    try:
        return int(pltpu.get_tpu_info().vmem_capacity_bytes)
    except Exception:
        return 64 * 1024 * 1024  # conservative (v7x per-core VMEM)


def _round_up(a: int, m: int) -> int:
    return -(-a // m) * m


def _pick_pack(rows: int, w: int) -> int:
    """Rows packed into the lane dim so blocks are lane-dense (>= 128 lanes)."""
    if w >= _LANE or rows <= 1:
        return 1
    p_min = pl.cdiv(_LANE, w)
    p_max = max(p_min, _MAX_PACKED_LANES // w)
    # Prefer a packing whose lane width is a multiple of 128 (fully unmasked
    # stores); otherwise the smallest divisor of `rows` reaching 128 lanes.
    for want_aligned in (True, False):
        for p in range(p_min, p_max + 1):
            if rows % p:
                continue
            if want_aligned and (p * w) % _LANE:
                continue
            return p
    # No divisor reaches 128 lanes: take the largest divisor below it (masked
    # stores, but still correct — only hit for pathological rows counts).
    best = 1
    for p in range(1, p_min):
        if rows % p == 0:
            best = p
    return best


def _pick_rows_per_step(g_rows: int, per_row_bytes: int, subl: int,
                        block_budget: int) -> int:
    """Largest tile (rows per grid step) fitting the VMEM budget; grid uses
    pl.cdiv + masked last block (no exact-divisor search)."""
    cap = max(subl, (block_budget // per_row_bytes) // subl * subl)
    if g_rows <= cap:
        # Whole problem fits in one block: split into 2 steps when legal so the
        # v7x megacore (2 TensorCores) can shard the "parallel" grid axis.
        if g_rows > subl:
            return _round_up(pl.cdiv(g_rows, 2), subl)
        return g_rows  # tiny: single full-extent block (always legal)
    tg = cap
    # Prefer an even number of grid steps (2 TCs on v7x); shrinking multi-MiB
    # tiles slightly is cheap.
    steps = pl.cdiv(g_rows, tg)
    if steps > 1 and steps % 2 == 1:
        tg_even = _round_up(pl.cdiv(g_rows, steps + 1), subl)
        if tg_even >= subl and pl.cdiv(g_rows, tg_even) == steps + 1:
            tg = tg_even
    return tg


def _budgets(itemsize: int):
    cap = _vmem_capacity_bytes()
    # Keep the block budget conservative on 64 MiB parts (v7x), roomier on
    # 128 MiB parts (v5e/v6e).
    budget = min(cap // 2, 56 * 1024 * 1024)
    subl = 32 // itemsize  # 8 for f32, 16 for bf16 (sublane packing)
    return cap, budget, subl


def _vmem_limit(cap: int, footprint: int) -> int:
    return int(min(cap, max(footprint + footprint // 2, 32 * 1024 * 1024)))


# --------------------------------------------------------------------------- #
# pallas_call builders.
# --------------------------------------------------------------------------- #
def _upsample_packed(x2, p, w, precision):
    """x2: (rows/p, p*w)  ->  (rows/p, 4*p*w); rep does row + lane duplication."""
    g, kw = x2.shape
    dtype = x2.dtype
    isz = jnp.dtype(dtype).itemsize
    cap, budget, subl = _budgets(isz)

    rep = _packed_rep(p, w, dtype)
    rep_bytes = rep.size * isz

    # Per packed row per step: in + out blocks double-buffered + f32 dot result.
    per_row = 2 * (kw + 4 * kw) * isz + 4 * kw * 4
    block_budget = max(per_row * subl, budget - 2 * rep_bytes - (2 << 20))
    tg = _pick_rows_per_step(g, per_row, subl, block_budget)

    footprint = tg * per_row + 2 * rep_bytes + (2 << 20)
    call = pl.pallas_call(
        functools.partial(_dup_matmul_kernel, precision=precision),
        out_shape=jax.ShapeDtypeStruct((g, 4 * kw), dtype),
        grid_spec=pltpu.PrefetchScalarGridSpec(
            num_scalar_prefetch=0,
            grid=(pl.cdiv(g, tg),),
            in_specs=[
                pl.BlockSpec((tg, kw), lambda i: (i, 0)),
                pl.BlockSpec((kw, 4 * kw), lambda i: (0, 0)),  # constant block
            ],
            out_specs=pl.BlockSpec((tg, 4 * kw), lambda i: (i, 0)),
        ),
        compiler_params=pltpu.CompilerParams(
            dimension_semantics=("parallel",),
            vmem_limit_bytes=_vmem_limit(cap, footprint),
        ),
        cost_estimate=pl.CostEstimate(
            flops=2 * kw * g * 4 * kw,          # replication matmul (idle MXU)
            transcendentals=0,
            bytes_accessed=5 * g * kw * isz + rep_bytes,  # read 1x, write 4x
        ),
    )
    return call(x2, rep)


def _upsample_wide(x2, w, precision):
    """Large W (W > 256, W % 128 == 0): block the lane duplication over W chunks;
    the row-copy axis `a` is innermost so each input block is fetched once."""
    rows, _ = x2.shape
    dtype = x2.dtype
    isz = jnp.dtype(dtype).itemsize
    cap, budget, subl = _budgets(isz)

    cw = 256 if w % 256 == 0 else 128
    jw = w // cw
    rep = _lane_rep(cw, dtype)
    rep_bytes = rep.size * isz

    per_row = 2 * (cw + 2 * cw) * isz + 2 * cw * 4
    block_budget = max(per_row * subl, budget - 2 * rep_bytes - (2 << 20))
    tm = _pick_rows_per_step(rows, per_row, subl, block_budget)

    footprint = tm * per_row + 2 * rep_bytes + (2 << 20)
    call = pl.pallas_call(
        functools.partial(_dup_matmul_kernel, precision=precision),
        out_shape=jax.ShapeDtypeStruct((rows, 4 * w), dtype),
        grid_spec=pltpu.PrefetchScalarGridSpec(
            num_scalar_prefetch=0,
            grid=(pl.cdiv(rows, tm), jw, 2),
            in_specs=[
                pl.BlockSpec((tm, cw), lambda i, j, a: (i, j)),
                pl.BlockSpec((cw, 2 * cw), lambda i, j, a: (0, 0)),
            ],
            out_specs=pl.BlockSpec((tm, 2 * cw), lambda i, j, a: (i, a * jw + j)),
        ),
        compiler_params=pltpu.CompilerParams(
            dimension_semantics=("parallel", "parallel", "arbitrary"),
            vmem_limit_bytes=_vmem_limit(cap, footprint),
        ),
        cost_estimate=pl.CostEstimate(
            flops=2 * cw * rows * 4 * w,
            transcendentals=0,
            bytes_accessed=5 * rows * w * isz + rep_bytes,
        ),
    )
    return call(x2, rep)


# --------------------------------------------------------------------------- #
# Public wrapper.
# --------------------------------------------------------------------------- #
def upsample_nearest_2x(x: jax.Array) -> jax.Array:
    """Equivalent of torch.nn.functional.interpolate(x, scale_factor=2, mode='nearest')."""
    n, c, h, w = x.shape
    if x.dtype == jnp.float32:
        precision = jax.lax.Precision.HIGHEST  # exact bf16x3 split of the f32 copy
    elif x.dtype == jnp.bfloat16:
        precision = jax.lax.Precision.DEFAULT  # bf16 * one-hot accumulated in f32 is exact
    else:
        # TODO(synk): integer/other dtypes bypass the MXU kernel (no exact int
        # matmul, and v7x's MXU has no integer support); plain XLA path instead.
        return jnp.repeat(jnp.repeat(x, 2, axis=2), 2, axis=3)

    rows = n * c * h
    if rows == 0 or w == 0:
        return jnp.zeros((n, c, 2 * h, 2 * w), x.dtype)

    if w > 256 and w % 128 == 0:
        out2 = _upsample_wide(x.reshape(rows, w), w, precision)
    else:
        p = _pick_pack(rows, w)
        out2 = _upsample_packed(x.reshape(rows // p, p * w), p, w, precision)

    # Row-major reshape back is free: each packed output row holds the 2h and
    # 2h+1 output rows contiguously, exactly matching (N, C, 2H, 2W) layout.
    return out2.reshape(n, c, 2 * h, 2 * w)


if __name__ == "__main__":
    key = jax.random.PRNGKey(0)
    x = jax.random.normal(key, (2, 4, 16, 16), dtype=jnp.float32)

    out = jax.block_until_ready(upsample_nearest_2x(x))

    ref = jnp.repeat(jnp.repeat(x, 2, axis=2), 2, axis=3)
    assert out.shape == (2, 4, 32, 32), out.shape
    assert out.dtype == x.dtype, out.dtype
    assert jnp.allclose(out, ref, rtol=1e-6, atol=0.0), "mismatch vs nearest-neighbor reference"
    print("KERNEL_OK")
</pallas_src>

<mosaic_0001>
module attributes {stable_mosaic.version = 11 : i64} {
  func.func @_dup_matmul_kernel(%arg0: i32, %arg1: memref<8x128xf32, #tpu.memory_space<vmem>>, %arg2: memref<128x512xf32, #tpu.memory_space<vmem>>, %arg3: memref<8x512xf32, #tpu.memory_space<vmem>>) attributes {dimension_semantics = [#tpu.dimension_semantics<parallel>], iteration_bounds = array<i64: 2>, scalar_prefetch = 0 : i64, scratch_operands = 0 : i64, tpu.core_type = #tpu.core_type<tc>, window_params = [{transform_indices = @transform_0, window_bounds = array<i64: 8, 128>}, {pipeline_mode = #tpu.pipeline_mode<synchronous>, transform_indices = @transform_1, window_bounds = array<i64: 128, 512>}, {transform_indices = @transform_2, window_bounds = array<i64: 8, 512>}]} {
    %c0 = arith.constant 0 : index
    %c0_0 = arith.constant 0 : index
    %0 = vector.load %arg1[%c0, %c0_0] : memref<8x128xf32, #tpu.memory_space<vmem>>, vector<8x128xf32>
    %c0_1 = arith.constant 0 : index
    %c0_2 = arith.constant 0 : index
    %1 = vector.load %arg2[%c0_1, %c0_2] : memref<128x512xf32, #tpu.memory_space<vmem>>, vector<128x512xf32>
    %cst = arith.constant dense<0.000000e+00> : vector<8x512xf32>
    %2 = tpu.matmul %0, %1, %cst {dimension_numbers = #tpu.dot_dimension_numbers<[1], [0], [0], [1], [0, 0, 1, 1], [], []>, precision = #tpu.contract_precision<fp32>} : vector<8x128xf32>, vector<128x512xf32>, vector<8x512xf32> -> vector<8x512xf32>
    %c0_3 = arith.constant 0 : index
    %c0_4 = arith.constant 0 : index
    %3 = vector.load %arg3[%c0_3, %c0_4] : memref<8x512xf32, #tpu.memory_space<vmem>>, vector<8x512xf32>
    tpu.vector_store %arg3[%c0_3, %c0_4], %2 {strides = array<i32>} : memref<8x512xf32, #tpu.memory_space<vmem>>, vector<8x512xf32>,
    return
  }
  func.func @transform_0(%arg0: i32) -> (i32, i32) {
    %c0_i32 = arith.constant 0 : i32
    %c0_i32_0 = arith.constant 0 : i32
    return %arg0, %c0_i32 : i32, i32
  }
  func.func @transform_1(%arg0: i32) -> (i32, i32) {
    %c0_i32 = arith.constant 0 : i32
    %c0_i32_0 = arith.constant 0 : i32
    %c0_i32_1 = arith.constant 0 : i32
    return %c0_i32, %c0_i32_0 : i32, i32
  }
  func.func @transform_2(%arg0: i32) -> (i32, i32) {
    %c0_i32 = arith.constant 0 : i32
    %c0_i32_0 = arith.constant 0 : i32
    return %arg0, %c0_i32 : i32, i32
  }
}

</mosaic_0001>

<bundles_post_ra>
// kernel: tpu_custom_call.1
= control target key start
LH: loop header
LB: loop body
LE: loop exit
PB: predicated region body
PF: predicated region fallthrough
CT: control target
= control target key end

     0   :  { %7 = vsyncpa [#allocation3], 0  ;;  %s3571_s0 = inlined_call_operand.hbm [shape: f32[16,128], index: 0, kind: input, shape index: {}]   ;;  %s3572_s1 = inlined_call_operand.hbm [shape: f32[128,512], index: 1, kind: input, shape index: {}]   ;;  %s3573_s2 = inlined_call_operand.hbm [shape: f32[16,512], index: 2, kind: output, shape index: {}]  }
   0x1   :  { %9 = vsyncpa [#allocation3 + $0x1], 0 }
   0x2   :  { %10 = vsyncpa [#allocation6], 0 }
   0x3   :  { %11 = vsyncpa [#allocation4], 0 }
   0x4   :  { %13 = vsyncpa [#allocation4 + $0x1], 0  ;;  %s2269_s9 = smov 0   ;;  %s2271_s10 = smov 0  }
   0x5   :  { %s2273_s11 = smov 0   ;;  %s2275_s12 = smov 0  }
   0x6 LB: > { %s2290_s13 = sadd.s32 4294967295, %s2246_s12   ;;  %s2048_s14 = sadd.s32 4294967294, %s2246_s12   ;;  %s2246_s12 = sphi %s2275_s12, %s3911_s12   ;;  %s2242_s11 = sphi %s2273_s11, %s3910_s11   ;;  %s2238_s10 = sphi %s2271_s10, %s3909_s10   ;;  %s2234_s9 = sphi %s2269_s9, %s3908_s9  }
   0x7   : > { %p39_p0 = scmp.ne.s32.totalorder %s2238_s10, %s2234_s9  ;;  %p3574_p1 = scmp.eq.s32.totalorder %s2290_s13, 0 }
   0x8   : > { %p90_p3 = scmp.eq.s32.totalorder %s2048_s14, 1  ;;  %p2049_p5 = scmp.ge.s32.totalorder %s2246_s12, 1 }
   0x9   : > { %p2299_p4 = por %p3574_p1, %p39_p0  ;;  %p97_p7 = scmp.lt.s32.totalorder %s2246_s12, 3 }
   0xa   : > { %p2304_p6 = por %p90_p3, %p39_p0  ;;  %s2248_s18 = smov [#allocation5]  }
   0xb   : > { %s3704_s15 = scalar_select %p2299_p4, 1, 0 }
   0xc   : > { %s3705_s16 = scalar_select %p2304_p6, 1, 0 }
   0xd   : > { %p2309_p8 = pnand %p2049_p5, %p97_p7  ;;  %s109_s19 = sshll.u32 %s2248_s18, 4  ;;  %s110_s19 = int_to_ptr.vmem [resolvable:$true] %s109_s19 }
   0xe   : > { %s2323_s21 = sadd.s32 1, %s2246_s12   ;;  %s26_s22 = sadd.s32 1, %s2242_s11 }
   0xf   : > { %s3706_s17 = scalar_select %p2309_p8, 1, 0 }
  0x10   : > { %p2072_p9 = pneg %p2309_p8  ;;  %s23_s23 = ssub.s32 %s2246_s12, %s2323_s21 }
  0x11   : > { %s2135_s24 = scalar_lea.vmem %s110_s19, 8192  ;;  %p2143_p5 = scmp.lt.s32.totalorder %s110_s19, %s110_s19 }
  0x12   : > { %p2318_p11 = pnand %p2072_p9, %p3574_p1  ;;  %p2136_p13 = scmp.ne.s32.totalorder %s110_s19, %s2135_s24 }
  0x13   : > { %p2144_p7 = scmp.lt.s32.totalorder %s2135_s24, %s2135_s24 }
  0x14   : > { %p2126_p12 = pneg %p2318_p11 }
  0x15   : > { %p2145_p10 = por %p2144_p7, %p2143_p5 }
  0x16   : > { %p2138_p0 = pnand %p2136_p13, %p2126_p12 }
  0x18   : > { %p2139_p3 = pneg %p2138_p0 }
  0x1a   : > { %p2146_p2 = pnand %p2145_p10, %p2139_p3 }
  0x1c   : > { %2149 = shalt.err (!%p2146_p2)
}
  0x1d   : > { %s2249_s25 = smov 512   ;;  %s2250_s26 = smov 32  }
  0x1e   : > { %2075 = dma.hbm_to_vmem [thread:$0]  (!%p2318_p11), %s3572_s1, 8192, %s110_s19, [#allocation6], %s2249_s25, %s2249_s25, %s2250_s26  }
  0x1f   : > { %p24_p9 = scmp.eq.s32.totalorder %s23_s23, 0  ;;  %p33_p12 = scmp.ne.s32.totalorder %s2242_s11, %s2238_s10 }
  0x20   : > { %p34_p10 = scmp.eq.s32.totalorder %s2246_s12, 0  ;;  %p2085_p2 = scmp.lt.s32.totalorder %s2246_s12, 2 }
  0x21   : > { %s2340_s29 = scalar_select %p24_p9, %s2242_s11, %s26_s22  }
  0x22   : > { %p35_p13 = por %p34_p10, %p33_p12  ;;  %p3708_p0 = scmp.eq.s32.totalorder %s2290_s13, 1 }
  0x23   : > { %s123_s3 = sand.u32 1, %s2242_s11   ;;  %s2053_s4 = sshll.u32 %s2246_s12, 7 }
  0x24   : > { %p2344_p3 = por %p3708_p0, %p33_p12  ;;  %s2052_s5 = sshll.u32 %s123_s3, 3 }
  0x25   : > { %s2353_s8 = scalar_lea.hbm %s3571_s0, %s2053_s4  ;;  %s127_s14 = scalar_lea.vmem [#allocation2], %s2052_s5 }
  0x26   : > { %s3709_s30 = scalar_select %p2344_p3, 1, 0 }
  0x27   : > { %s134_s18 = sshll.u32 %s127_s14, 4  ;;  %p2355_p11 = pnand %p2085_p2, %p35_p13  ;;  %s135_s18 = int_to_ptr.vmem [resolvable:$true] %s134_s18 }
  0x28   : > { %s124_s20 = scalar_lea.sflag [#allocation3], %s123_s3  ;;  %s2150_s22 = scalar_lea.hbm %s2353_s8, 128 }
  0x29   : > { %p2151_p5 = scmp.ne.s32.totalorder %s2353_s8, %s2150_s22  ;;  %p2152_p7 = pneg %p2355_p11 }
  0x2a   : > { %s2155_s25 = scalar_lea.hbm %s3571_s0, 256  ;;  %p2156_p10 = scmp.lt.s32.totalorder %s2353_s8, %s3571_s0 }
  0x2b   : > { %p2153_p9 = pnand %p2152_p7, %p2151_p5  ;;  %p2157_p2 = scmp.lt.s32.totalorder %s2155_s25, %s2150_s22 }
  0x2d   : > { %p2154_p12 = pneg %p2153_p9  ;;  %p2158_p13 = por %p2157_p2, %p2156_p10 }
  0x2f   : > { %p2159_p0 = pnand %p2158_p13, %p2154_p12 }
  0x31   : > { %2162 = shalt.err (!%p2159_p0)
}
  0x32   : > { %s2163_s28 = scalar_lea.vmem %s135_s18, 128  ;;  %s2251_s3 = smov [#allocation2]  }
  0x33   : > { %p2164_p1 = scmp.ne.s32.totalorder %s135_s18, %s2163_s28  ;;  %s2168_s4 = sshll.u32 %s2251_s3, 4  ;;  %s2169_s4 = int_to_ptr.vmem [resolvable:$false] %s2168_s4 }
  0x34   : > { %s2170_s5 = scalar_lea.vmem %s2169_s4, 256  ;;  %p2171_p5 = scmp.lt.s32.totalorder %s135_s18, %s2169_s4 }
  0x35   : > { %p2166_p6 = pnand %p2164_p1, %p2152_p7  ;;  %p2172_p9 = scmp.lt.s32.totalorder %s2170_s5, %s2163_s28 }
  0x37   : > { %p2167_p3 = pneg %p2166_p6  ;;  %p2173_p4 = por %p2172_p9, %p2171_p5 }
  0x39   : > { %p2174_p8 = pnand %p2173_p4, %p2167_p3 }
  0x3b   : > { %2177 = shalt.err (!%p2174_p8)
}
  0x3c   : > { %2079 = dma.hbm_to_vmem [thread:$0]  (!%p2355_p11), %s2353_s8, 128, %s135_s18, %s124_s20  }
  0x3d   : > { %p3711_p12 = scmp.ne.s32.totalorder %s3706_s17, 0 }
  0x3f   : > { %143 = sbr.rel (%p3711_p12) target bundleno = 504 (0x1f8), region = 28 }
  0x44   : > { %s2376_s6 = sand.u32 1, %s2238_s10   ;;  %p3712_p1 = scmp.ne.s32.totalorder %s3704_s15, 0 }
  0x45   : > { %s2055_s7 = sshll.u32 %s2376_s6, 3  ;;  %s146_s14 = scalar_lea.sflag [#allocation3], %s2376_s6 }
  0x46   : > { %s2380_s22 = scalar_lea.vmem [#allocation2], %s2055_s7 }
  0x47   : > { %2221 = dma.done.wait (%p3712_p1), %s146_s14, 128  }
  0x48   : > { %2223 = vsyncadd (%p3712_p1), %s146_s14, 4294967168  ;;  %p3713_p4 = scmp.eq.s32.totalorder %s2290_s13, 0 }
  0x4a   : > { %2225 = dma.done.wait (%p3713_p4), [#allocation6], 8192   ;;  %p3714_p6 = pmov %p3713_p4 }
  0x4b   : > { %v3592_v0 = vmov 0.0   ;;  %v236_v1 = vld [vmem:[#allocation5 + $0x1e8] sm:$0xff]  ;;  %v235_v2 = vld [vmem:[#allocation5 + $0x1e0] sm:$0xff]  ;;  %s2057_s15 = sshll.u32 %s2376_s6, 5  ;;  %s2063_s8 = sshll.u32 %s2290_s13, 9 }
  0x4c   : > { %2227 = vsyncadd (%p3714_p6), [#allocation6], 4294959104  ;;  %335 = vmatprep.mubr.f32.mxu0 %v3592_v0  ;;  %571 = vmatprep.mubr.f32.mxu1 %v3592_v0  ;;  %v232_v3 = vld [vmem:[#allocation5 + $0x1c8] sm:$0xff]  ;;  %v2392_v4 = vand.u32 4294901760, %v236_v1  ;;  %v2394_v5 = vand.u32 4294901760, %v235_v2  ;;  %v231_v7 = vld [vmem:[#allocation5 + $0x1c0] sm:$0xff]  ;;  %s1966_s23 = scalar_lea.hbm %s3573_s2, %s2063_s8 }
  0x4d   : > { %v2396_v6 = vand.u32 4294901760, %v232_v3  ;;  %v228_v8 = vld [vmem:[#allocation5 + $0x1a8] sm:$0xff]  ;;  %v227_v9 = vld [vmem:[#allocation5 + $0x1a0] sm:$0xff]  ;;  %v2398_v10 = vand.u32 4294901760, %v231_v7  ;;  %s3529_s17 = scalar_lea.vmem [#allocation7], %s2057_s15  ;;  %s1954_s24 = scalar_lea.sflag [#allocation4], %s2376_s6 }
  0x4e   : > { %v2400_v11 = vand.u32 4294901760, %v228_v8  ;;  %v2402_v12 = vand.u32 4294901760, %v227_v9  ;;  %v224_v13 = vld [vmem:[#allocation5 + $0x188] sm:$0xff]  ;;  %v223_v14 = vld [vmem:[#allocation5 + $0x180] sm:$0xff]  ;;  %240 = vmatprep.subr.mxu0 %v2392_v4  ;;  %v2412_v19 = vsub.f32 %v236_v1, %v2392_v4  ;;  %v2425_v24 = vsub.f32 %v235_v2, %v2394_v5  ;;  %s1968_s18 = sshll.u32 %s3529_s17, 4  ;;  %p3905_p3 = scmp.ne.s32.totalorder %s3709_s30, 0  ;;  %s1969_s18 = int_to_ptr.vmem [resolvable:$true] %s1968_s18 }
  0x4f   : > { %v220_v15 = vld [vmem:[#allocation5 + $0x168] sm:$0xff]  ;;  %v2405_v16 = vand.u32 4294901760, %v224_v13  ;;  %v2407_v17 = vand.u32 4294901760, %v223_v14  ;;  %v2414_v20 = vld [vmem:[#allocation5 + $0x160] sm:$0xff]  ;;  %242 = vmatpush1.msra.mxu0 %v2394_v5  ;;  %v2431_v26 = vsub.f32 %v232_v3, %v2396_v6  ;;  %v2445_v32 = vsub.f32 %v231_v7, %v2398_v10  ;;  %s2178_s25 = scalar_lea.vmem %s1969_s18, 512  ;;  %s2253_s26 = smov [#allocation7]  }
  0x50   : > { %v2409_v18 = vand.u32 4294901760, %v220_v15  ;;  %v2416_v21 = vld [vmem:[#allocation5 + $0x148] sm:$0xff]  ;;  %v2418_v22 = vld [vmem:[#allocation5 + $0x140] sm:$0xff]  ;;  %v2422_v23 = vand.u32 4294901760, %v2414_v20  ;;  %244 = vmatprep.subr.mxu0 %v2396_v6  ;;  %v3590_v30 = vand.u32 4294901760, %v2412_v19  ;;  %v3589_v34 = vand.u32 4294901760, %v2425_v24  ;;  %p2179_p8 = scmp.ne.s32.totalorder %s1969_s18, %s2178_s25 }
  0x51   : > { %v2428_v25 = vand.u32 4294901760, %v2416_v21  ;;  %v2433_v27 = vld [vmem:[#allocation5 + $0x128] sm:$0xff]  ;;  %v2435_v28 = vld [vmem:[#allocation5 + $0x120] sm:$0xff]  ;;  %v2442_v31 = vand.u32 4294901760, %v2418_v22  ;;  %246 = vmatpush1.msra.mxu0 %v2398_v10  ;;  %v3587_v35 = vand.u32 4294901760, %v2431_v26  ;;  %v2454_v36 = vsub.f32 %v228_v8, %v2400_v11  ;;  %s2182_s13 = sshll.u32 %s2253_s26, 4  ;;  %s2183_s13 = int_to_ptr.vmem [resolvable:$false] %s2182_s13 }
  0x52   : > { %v2437_v29 = vld [vmem:[#allocation5 + $0x108] sm:$0xff]  ;;  %v2448_v33 = vand.u32 4294901760, %v2433_v27  ;;  %v2457_v37 = vand.u32 4294901760, %v2435_v28  ;;  %v2459_v38 = vld [vmem:[#allocation5 + $0x100] sm:$0xff]  ;;  %248 = vmatprep.subr.mxu0 %v2400_v11  ;;  %v350_v39 = vsub.f32 %v2412_v19, %v3590_v30  ;;  %v3585_v40 = vand.u32 4294901760, %v2445_v32  ;;  %p2180_p11 = pnand %p2179_p8, %p3905_p3  ;;  %s2184_s27 = scalar_lea.vmem %s2183_s13, 1024 }
  0x53   : > { %3715 = vst [vmem:[#allocation11_spill] sm:$0xff] %v2442_v31  ;;  %v2467_v41 = vsub.f32 %v227_v9, %v2402_v12  ;;  %v2470_v42 = vand.u32 4294901760, %v2437_v29  ;;  %250 = vmatpush1.msra.mxu0 %v2402_v12  ;;  %v356_v43 = vsub.f32 %v2425_v24, %v3589_v34  ;;  %v362_v44 = vsub.f32 %v2431_v26, %v3587_v35  ;;  %v2483_v47 = vld [vmem:[#allocation5 + $0xe8] sm:$0xff]  ;;  %v2493_v52 = vld [vmem:[#allocation5 + $0xe0] sm:$0xff]  ;;  %p2185_p10 = scmp.lt.s32.totalorder %s1969_s18, %s2183_s13  ;;  %p2186_p2 = scmp.lt.s32.totalorder %s2184_s27, %s2178_s25 }
  0x54   : > { %3716 = vst [vmem:[#allocation12_spill] sm:$0xff] %v2448_v33  ;;  %3717 = vst [vmem:[#allocation13_spill] sm:$0xff] %v2457_v37  ;;  %v3584_v45 = vand.u32 4294901760, %v2454_v36  ;;  %v2481_v46 = vsub.f32 %v224_v13, %v2405_v16  ;;  %252 = vmatprep.subr.mxu0 %v2405_v16  ;;  %v351_v48 = vand.u32 4294901760, %v350_v39  ;;  %v368_v49 = vsub.f32 %v2445_v32, %v3585_v40  ;;  %v2500_v57 = vld [vmem:[#allocation5 + $0xc8] sm:$0xff]  ;;  %v2512_v62 = vld [vmem:[#allocation5 + $0xc0] sm:$0xff]  ;;  %p2181_p7 = pneg %p2180_p11 }
  0x55   : > { %3718 = vst [vmem:[#allocation14_spill] sm:$0xff] %v2470_v42  ;;  %v3582_v50 = vand.u32 4294901760, %v2467_v41  ;;  %v2491_v51 = vand.u32 4294901760, %v2459_v38  ;;  %254 = vmatpush1.msra.mxu0 %v2407_v17  ;;  %v357_v53 = vand.u32 4294901760, %v356_v43  ;;  %v363_v54 = vand.u32 4294901760, %v362_v44  ;;  %v2524_v7 = vld [vmem:[#allocation5 + $0xa8] sm:$0xff]  ;;  %p2187_p13 = por %p2186_p2, %p2185_p10 }
  0x56   : > { %v374_v55 = vsub.f32 %v2454_v36, %v3584_v45  ;;  %v3580_v56 = vand.u32 4294901760, %v2481_v46  ;;  %256 = vmatprep.subr.mxu0 %v2409_v18  ;;  %352 = vmatprep.subr.mxu1 %v351_v48  ;;  %v369_v58 = vand.u32 4294901760, %v368_v49  ;;  %v2507_v60 = vsub.f32 %v223_v14, %v2407_v17  ;;  %v2602_v45 = vld [vmem:[#allocation5 + $0x60] sm:$0xff]  ;;  %v2615_v35 = vld [vmem:[#allocation5 + $0x48] sm:$0xff] }
  0x57   : > { %3719 = vst [vmem:[#allocation15_spill] sm:$0xff] %v2491_v51  ;;  %v380_v59 = vsub.f32 %v2467_v41, %v3582_v50  ;;  %v2510_v61 = vand.u32 4294901760, %v2483_v47  ;;  %258 = vmatpush1.msra.mxu0 %v2422_v23  ;;  %358 = vmatpush1.msra.mxu1 %v357_v53  ;;  %v2519_v2 = vsub.f32 %v220_v15, %v2409_v18  ;;  %v2522_v3 = vand.u32 4294901760, %v2493_v52  ;;  %v2535_v15 = vld [vmem:[#allocation5 + $0xa0] sm:$0xff]  ;;  %p2188_p0 = pnand %p2187_p13, %p2181_p7 }
  0x58   : > { %v375_v63 = vand.u32 4294901760, %v374_v55  ;;  %v386_v1 = vsub.f32 %v2481_v46, %v3580_v56  ;;  %260 = vmatprep.subr.mxu0 %v2428_v25  ;;  %364 = vmatprep.subr.mxu1 %v363_v54  ;;  %v3579_v9 = vand.u32 4294901760, %v2507_v60  ;;  %v2530_v13 = vsub.f32 %v2414_v20, %v2422_v23  ;;  %v2625_v34 = vld [vmem:[#allocation5 + $0x40] sm:$0xff] }
  0x59   : > { %3720 = vst [vmem:[#allocation16_spill] sm:$0xff] %v2510_v61  ;;  %3721 = vst [vmem:[#allocation17_spill] sm:$0xff] %v2522_v3  ;;  %v381_v8 = vand.u32 4294901760, %v380_v59  ;;  %v2533_v14 = vand.u32 4294901760, %v2500_v57  ;;  %262 = vmatpush1.msra.mxu0 %v2442_v31  ;;  %370 = vmatpush1.msra.mxu1 %v369_v58  ;;  %v3578_v43 = vand.u32 4294901760, %v2519_v2  ;;  %v2541_v44 = vsub.f32 %v2416_v21, %v2428_v25  ;;  %v2558_v21 = vld [vmem:[#allocation5 + $0x88] sm:$0xff] }
  0x5a   : > { %v387_v39 = vand.u32 4294901760, %v386_v1  ;;  %v2544_v48 = vand.u32 4294901760, %v2512_v62  ;;  %264 = vmatprep.subr.mxu0 %v2448_v33  ;;  %376 = vmatprep.subr.mxu1 %v375_v63  ;;  %v392_v20 = vsub.f32 %v2507_v60, %v3579_v9  ;;  %v3581_v49 = vand.u32 4294901760, %v2530_v13  ;;  %v2581_v9 = vld [vmem:[#allocation5 + $0x80] sm:$0xff] }
  0x5b   : > { %3722 = vst [vmem:[#allocation18_spill] sm:$0xff] %v2533_v14  ;;  %v2553_v53 = vsub.f32 %v2418_v22, %v2442_v31  ;;  %v2556_v54 = vand.u32 4294901760, %v2524_v7  ;;  %266 = vmatpush1.msra.mxu0 %v2457_v37  ;;  %382 = vmatpush1.msra.mxu1 %v381_v8  ;;  %v398_v55 = vsub.f32 %v2519_v2, %v3578_v43  ;;  %v3583_v58 = vand.u32 4294901760, %v2541_v44 }
  0x5c   : > { %3723 = vst [vmem:[#allocation19_spill] sm:$0xff] %v2544_v48  ;;  %v2567_v59 = vsub.f32 %v2433_v27, %v2448_v33  ;;  %v2570_v22 = vand.u32 4294901760, %v2535_v15  ;;  %268 = vmatprep.subr.mxu0 %v2470_v42  ;;  %388 = vmatprep.subr.mxu1 %v387_v39  ;;  %v393_v63 = vand.u32 4294901760, %v392_v20  ;;  %v404_v1 = vsub.f32 %v2530_v13, %v3581_v49  ;;  %v2591_v49 = vld [vmem:[#allocation5 + $0x68] sm:$0xff]  ;;  %v174_v33 = vld [vmem:[%s2380_s22] sm:$0xff] }
  0x5d   : > { %3724 = vst [vmem:[#allocation20_spill] sm:$0xff] %v2556_v54  ;;  %v3586_v8 = vand.u32 4294901760, %v2553_v53  ;;  %v2579_v43 = vsub.f32 %v2435_v28, %v2457_v37  ;;  %270 = vmatpush1.msra.mxu0 %v2491_v51  ;;  %v399_v27 = vand.u32 4294901760, %v398_v55  ;;  %v410_v39 = vsub.f32 %v2541_v44, %v3583_v58 }
  0x5e   : > { %3725 = vst [vmem:[#allocation21_spill] sm:$0xff] %v2570_v22  ;;  %v3588_v20 = vand.u32 4294901760, %v2567_v59  ;;  %v2589_v56 = vand.u32 4294901760, %v2558_v21  ;;  %394 = vmatpush1.msra.mxu1 %v393_v63  ;;  %272 = vmatprep.subr.mxu0 %v2510_v61  ;;  %v405_v28 = vand.u32 4294901760, %v404_v1  ;;  %v2600_v58 = vsub.f32 %v2437_v29, %v2470_v42 }
  0x5f   : > { %v416_v50 = vsub.f32 %v2553_v53, %v3586_v8  ;;  %v3591_v55 = vand.u32 4294901760, %v2579_v43  ;;  %400 = vmatprep.subr.mxu1 %v399_v27  ;;  %274 = vmatpush1.msra.mxu0 %v2522_v3  ;;  %v411_v40 = vand.u32 4294901760, %v410_v39  ;;  %v2609_v1 = vand.u32 4294901760, %v2581_v9 }
  0x60   : > { %3726 = vst [vmem:[#allocation22_spill] sm:$0xff] %v2589_v56  ;;  %v422_v63 = vsub.f32 %v2567_v59, %v3588_v20  ;;  %v2613_v8 = vsub.f32 %v2459_v38, %v2491_v51  ;;  %406 = vmatpush1.msra.mxu1 %v405_v28  ;;  %276 = vmatprep.subr.mxu0 %v2533_v14  ;;  %v3596_v39 = vand.u32 4294901760, %v2600_v58  ;;  %v2623_v20 = vand.u32 4294901760, %v2591_v49 }
  0x61   : > { %3727 = vst [vmem:[#allocation23_spill] sm:$0xff] %v2609_v1  ;;  %v417_v29 = vand.u32 4294901760, %v416_v50  ;;  %v428_v27 = vsub.f32 %v2579_v43, %v3591_v55  ;;  %412 = vmatprep.subr.mxu1 %v411_v40  ;;  %278 = vmatpush1.msra.mxu0 %v2544_v48  ;;  %v2631_v50 = vsub.f32 %v2483_v47, %v2510_v61  ;;  %v2634_v30 = vand.u32 4294901760, %v2602_v45  ;;  %v2636_v55 = vld [vmem:[#allocation5 + $0x28] sm:$0xff] }
  0x62   : > { %3728 = vst [vmem:[#allocation24_spill] sm:$0xff] %v2623_v20  ;;  %v423_v38 = vand.u32 4294901760, %v422_v63  ;;  %v3599_v28 = vand.u32 4294901760, %v2613_v8  ;;  %280 = vmatprep.subr.mxu0 %v2556_v54  ;;  %v434_v40 = vsub.f32 %v2600_v58, %v3596_v39  ;;  %v2644_v63 = vsub.f32 %v2493_v52, %v2522_v3  ;;  %v2661_v52 = vld [vmem:[#allocation5 + $0x20] sm:$0xff] }
  0x63   : > { %3729 = vst [vmem:[#allocation25_spill] sm:$0xff] %v2634_v30  ;;  %418 = vmatpush1.msra.mxu1 %v417_v29  ;;  %v429_v0 = vand.u32 4294901760, %v428_v27  ;;  %v2647_v47 = vand.u32 4294901760, %v2615_v35  ;;  %282 = vmatpush1.msra.mxu0 %v2570_v22  ;;  %v2656_v61 = vsub.f32 %v2500_v57, %v2533_v14  ;;  %v2659_v39 = vand.u32 4294901760, %v2625_v34  ;;  %v2672_v57 = vld [vmem:[#allocation5 + $0x8] sm:$0xff] }
  0x64   : > { %424 = vmatprep.subr.mxu1 %v423_v38  ;;  %v440_v29 = vsub.f32 %v2613_v8, %v3599_v28  ;;  %284 = vmatprep.subr.mxu0 %v2589_v56  ;;  %v435_v38 = vand.u32 4294901760, %v434_v40  ;;  %v2667_v28 = vsub.f32 %v2512_v62, %v2544_v48  ;;  %v2670_v27 = vand.u32 4294901760, %v2636_v55  ;;  %v2695_v40 = vld [vmem:[#allocation5] sm:$0xff] }
  0x65   : > { %3730 = vst [vmem:[#allocation26_spill] sm:$0xff] %v2647_v47  ;;  %3731 = vst [vmem:[#allocation27_spill] sm:$0xff] %v2659_v39  ;;  %430 = vmatpush1.msra.mxu1 %v429_v0  ;;  %286 = vmatpush1.msra.mxu0 %v2609_v1  ;;  %v3733_v51 = vand.u32 4294901760, %v2631_v50  ;;  %v2681_v3 = vsub.f32 %v2524_v7, %v2556_v54  ;;  %v3734_v62 = vand.u32 4294901760, %v2644_v63  ;;  %v2689_v42 = vand.u32 4294901760, %v2661_v52 }
  0x66   : > { %3732 = vst [vmem:[#allocation28_spill] sm:$0xff] %v2670_v27  ;;  %v441_v14 = vand.u32 4294901760, %v440_v29  ;;  %436 = vmatprep.subr.mxu1 %v435_v38  ;;  %288 = vmatprep.subr.mxu0 %v2623_v20  ;;  %v3735_v38 = vand.u32 4294901760, %v2656_v61  ;;  %v2703_v29 = vand.u32 4294901760, %v2672_v57  ;;  %v2720_v31 = vand.u32 4294901760, %v2695_v40 }
  0x67   : > { %v446_v0 = vsub.f32 %v2631_v50, %v3733_v51  ;;  %v452_v48 = vsub.f32 %v2644_v63, %v3734_v62  ;;  %v2693_v51 = vsub.f32 %v2535_v15, %v2570_v22  ;;  %290 = vmatpush1.msra.mxu0 %v2634_v30  ;;  %v3618_v54 = vand.u32 4294901760, %v2681_v3 }
  0x68   : > { %442 = vmatpush1.msra.mxu1 %v441_v14  ;;  %v458_v62 = vsub.f32 %v2656_v61, %v3735_v38  ;;  %292 = vmatprep.subr.mxu0 %v2647_v47  ;;  %v3736_v15 = vand.u32 4294901760, %v2667_v28 }
  0x69   : > { %v447_v7 = vand.u32 4294901760, %v446_v0  ;;  %v453_v37 = vand.u32 4294901760, %v452_v48  ;;  %v2712_v0 = vsub.f32 %v2558_v21, %v2589_v56  ;;  %294 = vmatpush1.msra.mxu0 %v2659_v39  ;;  %v470_v48 = vsub.f32 %v2681_v3, %v3618_v54 }
  0x6a   : > { %v464_v22 = vsub.f32 %v2667_v28, %v3736_v15  ;;  %v459_v38 = vand.u32 4294901760, %v458_v62  ;;  %v2724_v15 = vsub.f32 %v2581_v9, %v2609_v1  ;;  %296 = vmatprep.subr.mxu0 %v2670_v27  ;;  %v3737_v21 = vand.u32 4294901760, %v2693_v51 }
  0x6b   : > { %448 = vmatprep.subr.mxu1 %v447_v7  ;;  %v3621_v62 = vand.u32 4294901760, %v2712_v0  ;;  %v2733_v54 = vsub.f32 %v2591_v49, %v2623_v20  ;;  %v471_v56 = vand.u32 4294901760, %v470_v48  ;;  %298 = vmatpush1.msra.mxu0 %v2689_v42  ;;  %v2750_v48 = vsub.f32 %v2615_v35, %v2647_v47 }
  0x6c   : > { %454 = vmatpush1.msra.mxu1 %v453_v37  ;;  %v465_v14 = vand.u32 4294901760, %v464_v22  ;;  %v476_v7 = vsub.f32 %v2693_v51, %v3737_v21  ;;  %v3624_v9 = vand.u32 4294901760, %v2724_v15  ;;  %v2737_v37 = vand.u32 4294901760, %v174_v33  ;;  %300 = vmatprep.subr.mxu0 %v2703_v29 }
  0x6d   : > { %460 = vmatprep.subr.mxu1 %v459_v38  ;;  %v2741_v22 = vsub.f32 %v2602_v45, %v2634_v30  ;;  %v482_v49 = vsub.f32 %v2712_v0, %v3621_v62  ;;  %302 = vmatpush1.msra.mxu0 %v2720_v31  ;;  %v2762_v62 = vsub.f32 %v2625_v34, %v2659_v39  ;;  %v3740_v35 = vand.u32 4294901760, %v2733_v54 }
  0x6e   : > { %3738 = vst [vmem:[#allocation29_spill] sm:$0xff] %v2737_v37  ;;  %466 = vmatpush1.msra.mxu1 %v465_v14  ;;  %v477_v21 = vand.u32 4294901760, %v476_v7  ;;  %v488_v45 = vsub.f32 %v2724_v15, %v3624_v9  ;;  %v2757_v14 = vsub.f32 %v174_v33, %v2737_v37  ;;  %581 = vmatprep.subr.mxu0 %v2412_v19  ;;  %v3631_v47 = vand.u32 4294901760, %v2750_v48 }
  0x6f   : > { %472 = vmatprep.subr.mxu1 %v471_v56  ;;  %v483_v38 = vand.u32 4294901760, %v482_v49  ;;  %v494_v56 = vsub.f32 %v2733_v54, %v3740_v35  ;;  %v2771_v33 = vsub.f32 %v2636_v55, %v2670_v27  ;;  %v3742_v34 = vand.u32 4294901760, %v2741_v22 }
  0x70   : > { %3739 = vst [vmem:[#allocation30_spill] sm:$0xff] %v2757_v14  ;;  %478 = vmatpush1.msra.mxu1 %v477_v21  ;;  %v489_v9 = vand.u32 4294901760, %v488_v45  ;;  %v2774_v7 = vand.u32 4294901760, %v2757_v14  ;;  %v3632_v49 = vand.u32 4294901760, %v2762_v62  ;;  %v506_v39 = vsub.f32 %v2750_v48, %v3631_v47 }
  0x71   : > { %v500_v21 = vsub.f32 %v2741_v22, %v3742_v34  ;;  %484 = vmatprep.subr.mxu1 %v483_v38  ;;  %v495_v35 = vand.u32 4294901760, %v494_v56  ;;  %v3638_v30 = vand.u32 4294901760, %v2771_v33  ;;  %v2786_v55 = vsub.f32 %v2661_v52, %v2689_v42 }
  0x72   : > { %3741 = vst [vmem:[#allocation31_spill] sm:$0xff] %v2774_v7  ;;  %490 = vmatpush1.msra.mxu1 %v489_v9  ;;  %v339_v45 = vsub.f32 %v2757_v14, %v2774_v7  ;;  %v512_v38 = vsub.f32 %v2762_v62, %v3632_v49  ;;  %v2795_v56 = vsub.f32 %v2672_v57, %v2703_v29  ;;  %v507_v34 = vand.u32 4294901760, %v506_v39 }
  0x73   : > { %3743 = vst [vmem:[#allocation32_spill] sm:$0xff] %v2786_v55  ;;  %v501_v27 = vand.u32 4294901760, %v500_v21  ;;  %496 = vmatprep.subr.mxu1 %v495_v35  ;;  %v518_v52 = vsub.f32 %v2771_v33, %v3638_v30  ;;  %v3637_v9 = vand.u32 4294901760, %v2786_v55  ;;  %v2803_v47 = vsub.f32 %v2695_v40, %v2720_v31  ;;  %v3758_v30 = vld [vmem:[#allocation22_spill] sm:$0xff] }
  0x74   : > { %v2805_v21 = vand.u32 4294901760, %v339_v45  ;;  %v513_v49 = vand.u32 4294901760, %v512_v38  ;;  %v3636_v7 = vand.u32 4294901760, %v2795_v56 }
  0x75   : > { %3744 = vst [vmem:[#allocation33_spill] sm:$0xff] %v2803_v47  ;;  %502 = vmatpush1.msra.mxu1 %v501_v27  ;;  %v519_v57 = vand.u32 4294901760, %v518_v52  ;;  %v524_v39 = vsub.f32 %v2786_v55, %v3637_v9  ;;  %v3635_v35 = vand.u32 4294901760, %v2803_v47  ;;  %v3747_v52 = vld [vmem:[#allocation11_spill] sm:$0xff]  ;;  %v3757_v9 = vld [vmem:[#allocation21_spill] sm:$0xff] }
  0x76   : > { %3745 = vst [vmem:[#allocation34_spill] sm:$0xff] %v2805_v21  ;;  %508 = vmatprep.subr.mxu1 %v507_v34  ;;  %341 = vmatmul.mubr.f32.vlgmr.msra.gmra.mxu0 %v2805_v21  ;;  %v530_v40 = vsub.f32 %v2795_v56, %v3636_v7  ;;  %v3746_v34 = vmov 0.0   ;;  %v3756_v7 = vld [vmem:[#allocation20_spill] sm:$0xff]  ;;  %v3759_v21 = vand.u32 4294901760, %v2412_v19  ;;  %v3767_v19 = vand.u32 4294901760, %v2454_v36 }
  0x77   : > { %514 = vmatpush1.msra.mxu1 %v513_v49  ;;  %584 = vmatpush1.msra.mxu0 %v2425_v24  ;;  %v525_v27 = vand.u32 4294901760, %v524_v39  ;;  %v536_v45 = vsub.f32 %v2803_v47, %v3635_v35  ;;  %v3749_v39 = vld [vmem:[#allocation13_spill] sm:$0xff]  ;;  %v3755_v35 = vld [vmem:[#allocation19_spill] sm:$0xff] }
  0x78   : > { %520 = vmatprep.subr.mxu1 %v519_v57  ;;  %587 = vmatprep.subr.mxu0 %v2431_v26  ;;  %v531_v38 = vand.u32 4294901760, %v530_v40  ;;  %v3748_v57 = vld [vmem:[#allocation12_spill] sm:$0xff]  ;;  %v3750_v40 = vld [vmem:[#allocation14_spill] sm:$0xff] }
  0x79   : > { %707 = vmatprep.mubr.f32.mxu0 %v3746_v34  ;;  %590 = vmatpush1.msra.mxu0 %v2445_v32  ;;  %v537_v49 = vand.u32 4294901760, %v536_v45  ;;  %v3752_v45 = vld [vmem:[#allocation16_spill] sm:$0xff] }
  0x7a   : > { %526 = vmatpush1.msra.mxu1 %v525_v27  ;;  %593 = vmatprep.subr.mxu0 %v2454_v36  ;;  %v3751_v27 = vld [vmem:[#allocation15_spill] sm:$0xff]  ;;  %v3772_v36 = vand.u32 4294901760, %v2519_v2 }
  0x7b   : > { %532 = vmatprep.subr.mxu1 %v531_v38  ;;  %596 = vmatpush1.msra.mxu0 %v2467_v41  ;;  %v3753_v38 = vld [vmem:[#allocation17_spill] sm:$0xff] }
  0x7c   : > { %538 = vmatpush1.msra.mxu1 %v537_v49  ;;  %599 = vmatprep.subr.mxu0 %v2481_v46  ;;  %v3754_v49 = vld [vmem:[#allocation18_spill] sm:$0xff] }
  0x7d   : > { %573 = vmatmul.mubr.f32.vlgmr.msra.gmra.mxu1 %v2737_v37  ;;  %602 = vmatpush1.msra.mxu0 %v2507_v60  ;;  %v3760_v37 = vld [vmem:[#allocation25_spill] sm:$0xff] }
  0x7e   : > { %717 = vmatprep.subr.mxu1 %v2392_v4  ;;  %605 = vmatprep.subr.mxu0 %v2519_v2  ;;  %v3776_v2 = vand.u32 4294901760, %v2567_v59 }
  0x7f   : > { %719 = vmatpush1.msra.mxu1 %v2394_v5  ;;  %608 = vmatpush1.msra.mxu0 %v2530_v13 }
  0x80   : > { %721 = vmatprep.subr.mxu1 %v2396_v6  ;;  %611 = vmatprep.subr.mxu0 %v2541_v44 }
  0x81   : > { %723 = vmatpush1.msra.mxu1 %v2398_v10  ;;  %614 = vmatpush1.msra.mxu0 %v2553_v53 }
  0x82   : > { %725 = vmatprep.subr.mxu1 %v2400_v11  ;;  %617 = vmatprep.subr.mxu0 %v2567_v59  ;;  %v3783_v59 = vand.u32 4294901760, %v2667_v28 }
  0x83   : > { %727 = vmatpush1.msra.mxu1 %v2402_v12  ;;  %620 = vmatpush1.msra.mxu0 %v2579_v43 }
  0x84   : > { %729 = vmatprep.subr.mxu1 %v2405_v16  ;;  %623 = vmatprep.subr.mxu0 %v2600_v58 }
  0x85   : > { %731 = vmatpush1.msra.mxu1 %v2407_v17  ;;  %626 = vmatpush1.msra.mxu0 %v2613_v8 }
  0x86   : > { %733 = vmatprep.subr.mxu1 %v2409_v18  ;;  %629 = vmatprep.subr.mxu0 %v2631_v50 }
  0x87   : > { %735 = vmatpush1.msra.mxu1 %v2422_v23  ;;  %632 = vmatpush1.msra.mxu0 %v2644_v63 }
  0x88   : > { %737 = vmatprep.subr.mxu1 %v2428_v25  ;;  %635 = vmatprep.subr.mxu0 %v2656_v61 }
  0x89   : > { %739 = vmatpush1.msra.mxu1 %v3747_v52  ;;  %638 = vmatpush1.msra.mxu0 %v2667_v28  ;;  %v225_v28 = vld [vmem:[#allocation5 + $0x190] sm:$0xff] }
  0x8a   : > { %741 = vmatprep.subr.mxu1 %v3748_v57  ;;  %641 = vmatprep.subr.mxu0 %v2681_v3 }
  0x8b   : > { %743 = vmatpush1.msra.mxu1 %v3749_v39  ;;  %644 = vmatpush1.msra.mxu0 %v2693_v51 }
  0x8c   : > { %745 = vmatprep.subr.mxu1 %v3750_v40  ;;  %647 = vmatprep.subr.mxu0 %v2712_v0 }
  0x8d   : > { %747 = vmatpush1.msra.mxu1 %v3751_v27  ;;  %650 = vmatpush1.msra.mxu0 %v2724_v15 }
  0x8e   : > { %749 = vmatprep.subr.mxu1 %v3752_v45  ;;  %653 = vmatprep.subr.mxu0 %v2733_v54 }
  0x8f   : > { %751 = vmatpush1.msra.mxu1 %v3753_v38  ;;  %656 = vmatpush1.msra.mxu0 %v2741_v22 }
  0x90   : > { %753 = vmatprep.subr.mxu1 %v3754_v49  ;;  %659 = vmatprep.subr.mxu0 %v2750_v48 }
  0x91   : > { %755 = vmatpush1.msra.mxu1 %v3755_v35  ;;  %662 = vmatpush1.msra.mxu0 %v2762_v62 }
  0x92   : > { %757 = vmatprep.subr.mxu1 %v3756_v7  ;;  %665 = vmatprep.subr.mxu0 %v2771_v33 }
  0x93   : > { %759 = vmatpush1.msra.mxu1 %v3757_v9  ;;  %668 = vmatpush1.msra.mxu0 %v2786_v55  ;;  %v3761_v9 = vand.u32 4294901760, %v2425_v24  ;;  %v3762_v55 = vld [vmem:[#allocation26_spill] sm:$0xff]  ;;  %v3768_v24 = vand.u32 4294901760, %v2467_v41  ;;  %v3773_v41 = vand.u32 4294901760, %v2530_v13  ;;  %v237_v13 = vld [vmem:[#allocation5 + $0x1f0] sm:$0xff] }
  0x94   : > { %761 = vmatprep.subr.mxu1 %v3758_v30  ;;  %671 = vmatprep.subr.mxu0 %v2795_v56  ;;  %v3763_v30 = vand.u32 4294901760, %v2431_v26  ;;  %v3769_v26 = vand.u32 4294901760, %v2481_v46  ;;  %v3774_v46 = vand.u32 4294901760, %v2541_v44  ;;  %v3779_v44 = vand.u32 4294901760, %v2613_v8  ;;  %v229_v8 = vld [vmem:[#allocation5 + $0x1b0] sm:$0xff] }
  0x95   : > { %763 = vmatpush1.msra.mxu1 %v2609_v1  ;;  %674 = vmatpush1.msra.mxu0 %v2803_v47  ;;  %v3764_v1 = vld [vmem:[#allocation27_spill] sm:$0xff]  ;;  %v3765_v47 = vand.u32 4294901760, %v2445_v32 }
  0x96   : > { %765 = vmatprep.subr.mxu1 %v2623_v20  ;;  %710 = vmatmul.mubr.f32.vlgmr.msra.gmra.mxu0 %v2757_v14  ;;  %v3766_v20 = vld [vmem:[#allocation28_spill] sm:$0xff]  ;;  %v3771_v32 = vld [vmem:[#allocation31_spill] sm:$0xff] }
  0x97   : > { %825 = vmatprep.subr.mxu0 %v3759_v21  ;;  %767 = vmatpush1.msra.mxu1 %v3760_v37  ;;  %v2970_v21 = vand.u32 4294901760, %v229_v8 }
  0x98   : > { %829 = vmatpush1.msra.mxu0 %v3761_v9  ;;  %769 = vmatprep.subr.mxu1 %v3762_v55  ;;  %v3787_v9 = vand.u32 4294901760, %v2724_v15  ;;  %v222_v15 = vld [vmem:[#allocation5 + $0x178] sm:$0xff] }
  0x99   : > { %833 = vmatprep.subr.mxu0 %v3763_v30  ;;  %771 = vmatpush1.msra.mxu1 %v3764_v1  ;;  %v3770_v30 = vand.u32 4294901760, %v2507_v60  ;;  %v3775_v60 = vand.u32 4294901760, %v2553_v53  ;;  %v3782_v53 = vand.u32 4294901760, %v2656_v61  ;;  %v3785_v61 = vand.u32 4294901760, %v2693_v51  ;;  %3788 = vst [vmem:[#allocation11_spill] sm:$0xff] %v2970_v21 }
  0x9a   : > { %837 = vmatpush1.msra.mxu0 %v3765_v47  ;;  %773 = vmatprep.subr.mxu1 %v3766_v20 }
  0x9b   : > { %841 = vmatprep.subr.mxu0 %v3767_v19  ;;  %775 = vmatpush1.msra.mxu1 %v2689_v42 }
  0x9c   : > { %845 = vmatpush1.msra.mxu0 %v3768_v24  ;;  %777 = vmatprep.subr.mxu1 %v2703_v29 }
  0x9d   : > { %849 = vmatprep.subr.mxu0 %v3769_v26  ;;  %779 = vmatpush1.msra.mxu1 %v2720_v31  ;;  %v3792_v26 = vand.u32 4294901760, %v2750_v48 }
  0x9e   : > { %812 = vmatprep.mubr.f32.mxu1 %v3746_v34  ;;  %853 = vmatpush1.msra.mxu0 %v3770_v30 }
  0x9f   : > { %816 = vmatmul.mubr.f32.vlgmr.msra.gmra.mxu1 %v3771_v32  ;;  %857 = vmatprep.subr.mxu0 %v3772_v36  ;;  %v3794_v36 = vand.u32 4294901760, %v2762_v62  ;;  %v213_v62 = vld [vmem:[#allocation5 + $0x130] sm:$0xff] }
  0xa0   : > { %991 = vmatprep.subr.mxu1 %v2392_v4  ;;  %861 = vmatpush1.msra.mxu0 %v3773_v41  ;;  %v3777_v4 = vand.u32 4294901760, %v2579_v43  ;;  %v2998_v41 = vsub.f32 %v229_v8, %v2970_v21 }
  0xa1   : > { %993 = vmatpush1.msra.mxu1 %v2394_v5  ;;  %865 = vmatprep.subr.mxu0 %v3774_v46  ;;  %v3778_v5 = vand.u32 4294901760, %v2600_v58 }
  0xa2   : > { %995 = vmatprep.subr.mxu1 %v2396_v6  ;;  %869 = vmatpush1.msra.mxu0 %v3775_v60  ;;  %v238_v6 = vld [vmem:[#allocation5 + $0x1f8] sm:$0xff]  ;;  %v3008_v60 = vand.u32 4294901760, %v222_v15  ;;  %v3646_v8 = vand.u32 4294901760, %v2998_v41 }
  0xa3   : > { %997 = vmatpush1.msra.mxu1 %v2398_v10  ;;  %873 = vmatprep.subr.mxu0 %v3776_v2  ;;  %v233_v10 = vld [vmem:[#allocation5 + $0x1d0] sm:$0xff]  ;;  %v2933_v43 = vand.u32 4294901760, %v238_v6 }
  0xa4   : > { %999 = vmatprep.subr.mxu1 %v2400_v11  ;;  %877 = vmatpush1.msra.mxu0 %v3777_v4  ;;  %v3780_v11 = vand.u32 4294901760, %v2631_v50  ;;  %v2940_v58 = vand.u32 4294901760, %v233_v10  ;;  %3797 = vst [vmem:[#allocation15_spill] sm:$0xff] %v3008_v60  ;;  %v3799_v4 = vld [vmem:[#allocation32_spill] sm:$0xff] }
  0xa5   : > { %1001 = vmatpush1.msra.mxu1 %v2402_v12  ;;  %881 = vmatprep.subr.mxu0 %v3778_v5  ;;  %v3781_v12 = vand.u32 4294901760, %v2644_v63  ;;  %v2957_v63 = vsub.f32 %v238_v6, %v2933_v43  ;;  %v3801_v5 = vld [vmem:[#allocation21_spill] sm:$0xff] }
  0xa6   : > { %1003 = vmatprep.subr.mxu1 %v2405_v16  ;;  %885 = vmatpush1.msra.mxu0 %v3779_v44  ;;  %v2935_v16 = vand.u32 4294901760, %v237_v13  ;;  %v2963_v47 = vsub.f32 %v233_v10, %v2940_v58  ;;  %v214_v44 = vld [vmem:[#allocation5 + $0x138] sm:$0xff]  ;;  %v3803_v10 = vand.u32 4294901760, %v2795_v56 }
  0xa7   : > { %1005 = vmatpush1.msra.mxu1 %v2407_v17  ;;  %889 = vmatprep.subr.mxu0 %v3780_v11  ;;  %v234_v17 = vld [vmem:[#allocation5 + $0x1d8] sm:$0xff]  ;;  %v3652_v19 = vand.u32 4294901760, %v2957_v63 }
  0xa8   : > { %1007 = vmatprep.subr.mxu1 %v2409_v18  ;;  %893 = vmatpush1.msra.mxu0 %v3781_v12  ;;  %v230_v18 = vld [vmem:[#allocation5 + $0x1b8] sm:$0xff]  ;;  %v2954_v50 = vand.u32 4294901760, %v234_v17  ;;  %v3648_v30 = vand.u32 4294901760, %v2963_v47 }
  0xa9   : > { %1009 = vmatpush1.msra.mxu1 %v2422_v23  ;;  %897 = vmatprep.subr.mxu0 %v3782_v53  ;;  %v3784_v23 = vand.u32 4294901760, %v2681_v3  ;;  %v3786_v3 = vand.u32 4294901760, %v2712_v0  ;;  %v2965_v51 = vand.u32 4294901760, %v230_v18  ;;  %v2975_v0 = vand.u32 4294901760, %v225_v28  ;;  %v3804_v11 = vld [vmem:[#allocation22_spill] sm:$0xff] }
  0xaa   : > { %1011 = vmatprep.subr.mxu1 %v2428_v25  ;;  %901 = vmatpush1.msra.mxu0 %v3783_v59  ;;  %v2952_v25 = vsub.f32 %v237_v13, %v2935_v16  ;;  %v2983_v24 = vsub.f32 %v234_v17, %v2954_v50  ;;  %v3034_v12 = vsub.f32 %v2963_v47, %v3648_v30  ;;  %v3805_v59 = vld [vmem:[#allocation33_spill] sm:$0xff] }
  0xab   : > { %1013 = vmatpush1.msra.mxu1 %v3747_v52  ;;  %905 = vmatprep.subr.mxu0 %v3784_v23  ;;  %v226_v52 = vld [vmem:[#allocation5 + $0x198] sm:$0xff]  ;;  %3790 = vst [vmem:[#allocation12_spill] sm:$0xff] %v2975_v0  ;;  %v3006_v46 = vsub.f32 %v225_v28, %v2975_v0  ;;  %v3046_v23 = vand.u32 4294901760, %v213_v62  ;;  %v3808_v28 = vld [vmem:[#allocation23_spill] sm:$0xff] }
  0xac   : > { %1015 = vmatprep.subr.mxu1 %v3748_v57  ;;  %909 = vmatpush1.msra.mxu0 %v3785_v61  ;;  %v3789_v57 = vand.u32 4294901760, %v2733_v54  ;;  %v217_v54 = vld [vmem:[#allocation5 + $0x150] sm:$0xff]  ;;  %v3649_v13 = vand.u32 4294901760, %v2983_v24  ;;  %v210_v61 = vld [vmem:[#allocation5 + $0x118] sm:$0xff] }
  0xad   : > { %1017 = vmatpush1.msra.mxu1 %v3749_v39  ;;  %913 = vmatprep.subr.mxu0 %v3786_v3  ;;  %v221_v39 = vld [vmem:[#allocation5 + $0x170] sm:$0xff]  ;;  %v3010_v2 = vand.u32 4294901760, %v217_v54  ;;  %3807 = vst [vmem:[#allocation18_spill] sm:$0xff] %v3046_v23 }
  0xae   : > { %1019 = vmatprep.subr.mxu1 %v3750_v40  ;;  %917 = vmatpush1.msra.mxu0 %v3787_v9  ;;  %v3791_v40 = vand.u32 4294901760, %v2741_v22  ;;  %v218_v22 = vld [vmem:[#allocation5 + $0x158] sm:$0xff]  ;;  %v3000_v48 = vand.u32 4294901760, %v221_v39  ;;  %v3809_v3 = vld [vmem:[#allocation29_spill] sm:$0xff] }
  0xaf   : > { %1021 = vmatpush1.msra.mxu1 %v3751_v27  ;;  %921 = vmatprep.subr.mxu0 %v3789_v57  ;;  %v3651_v27 = vand.u32 4294901760, %v2952_v25  ;;  %3798 = vst [vmem:[#allocation16_spill] sm:$0xff] %v3010_v2  ;;  %v3025_v6 = vand.u32 4294901760, %v218_v22  ;;  %v3052_v9 = vsub.f32 %v217_v54, %v3010_v2  ;;  %v209_v57 = vld [vmem:[#allocation5 + $0x110] sm:$0xff]  ;;  %v3067_v54 = vsub.f32 %v2983_v24, %v3649_v13 }
  0xb0   : > { %1023 = vmatprep.subr.mxu1 %v3752_v45  ;;  %925 = vmatpush1.msra.mxu0 %v3791_v40  ;;  %v2988_v45 = vand.u32 4294901760, %v226_v52  ;;  %3795 = vst [vmem:[#allocation14_spill] sm:$0xff] %v3000_v48  ;;  %v3044_v56 = vsub.f32 %v221_v39, %v3000_v48  ;;  %v3650_v40 = vand.u32 4294901760, %v3006_v46  ;;  %v3058_v39 = vsub.f32 %v222_v15, %v3008_v60  ;;  %v198_v15 = vld [vmem:[#allocation5 + $0xb8] sm:$0xff] }
  0xb1   : > { %1025 = vmatpush1.msra.mxu1 %v3753_v38  ;;  %929 = vmatprep.subr.mxu0 %v3792_v26  ;;  %v2992_v38 = vsub.f32 %v230_v18, %v2965_v51  ;;  %3802 = vst [vmem:[#allocation17_spill] sm:$0xff] %v3025_v6  ;;  %v3806_v18 = vand.u32 4294901760, %v3805_v59  ;;  %v3811_v26 = vld [vmem:[#allocation24_spill] sm:$0xff]  ;;  %v3093_v59 = vand.u32 4294901760, %v209_v57  ;;  %v3172_v14 = vand.u32 4294901760, %v198_v15 }
  0xb2   : > { %1027 = vmatprep.subr.mxu1 %v3754_v49  ;;  %3793 = vst [vmem:[#allocation13_spill] sm:$0xff] %v2988_v45  ;;  %933 = vmatpush1.msra.mxu0 %v3794_v36  ;;  %v3796_v49 = vand.u32 4294901760, %v2771_v33  ;;  %v3018_v33 = vsub.f32 %v2957_v63, %v3652_v19  ;;  %v3038_v17 = vsub.f32 %v226_v52, %v2988_v45  ;;  %v3054_v52 = vand.u32 4294901760, %v214_v44 }
  0xb3   : > { %1029 = vmatpush1.msra.mxu1 %v3755_v35  ;;  %v3800_v35 = vand.u32 4294901760, %v3799_v4  ;;  %v3647_v53 = vand.u32 4294901760, %v2992_v38  ;;  %982 = vmatprep.mubr.f32.mxu0 %v3746_v34  ;;  %v205_v4 = vld [vmem:[#allocation5 + $0xf0] sm:$0xff]  ;;  %3813 = vst [vmem:[#allocation25_spill] sm:$0xff] %v3093_v59  ;;  %v3133_v19 = vsub.f32 %v209_v57, %v3093_v59  ;;  %3820 = vst [vmem:[#allocation33_spill] sm:$0xff] %v3172_v14 }
  0xb4   : > { %937 = vmatprep.subr.mxu0 %v3796_v49  ;;  %1031 = vmatprep.subr.mxu1 %v3756_v7  ;;  %v3023_v7 = vsub.f32 %v2952_v25, %v3651_v27  ;;  %3810 = vst [vmem:[#allocation19_spill] sm:$0xff] %v3054_v52  ;;  %v1206_v36 = vand.u32 4294901760, %v3018_v33  ;;  %v3080_v33 = vand.u32 4294901760, %v210_v61  ;;  %v193_v49 = vld [vmem:[#allocation5 + $0x90] sm:$0xff] }
  0xb5   : > { %941 = vmatpush1.msra.mxu0 %v3800_v35  ;;  %1033 = vmatpush1.msra.mxu1 %v3801_v5  ;;  %v3070_v35 = vsub.f32 %v218_v22, %v3025_v6  ;;  %v3078_v5 = vsub.f32 %v2992_v38, %v3647_v53  ;;  %v3091_v22 = vsub.f32 %v2998_v41, %v3646_v8  ;;  %v202_v8 = vld [vmem:[#allocation5 + $0xd8] sm:$0xff] }
  0xb6   : > { %945 = vmatprep.subr.mxu0 %v3803_v10  ;;  %1035 = vmatprep.subr.mxu1 %v3804_v11  ;;  %3812 = vst [vmem:[#allocation20_spill] sm:$0xff] %v3080_v33  ;;  %v3653_v10 = vand.u32 4294901760, %v3038_v17  ;;  %v201_v11 = vld [vmem:[#allocation5 + $0xd0] sm:$0xff]  ;;  %v3107_v53 = vsub.f32 %v214_v44, %v3054_v52  ;;  %3818 = vst [vmem:[#allocation21_spill] sm:$0xff] %v3133_v19 }
  0xb7   : > { %949 = vmatpush1.msra.mxu0 %v3806_v18  ;;  %1037 = vmatpush1.msra.mxu1 %v3808_v28  ;;  %v206_v18 = vld [vmem:[#allocation5 + $0xf8] sm:$0xff]  ;;  %v3654_v28 = vand.u32 4294901760, %v3044_v56  ;;  %v3657_v30 = vand.u32 4294901760, %v3070_v35  ;;  %v3113_v13 = vand.u32 4294901760, %v201_v11  ;;  %v1230_v27 = vand.u32 4294901760, %v3078_v5 }
  0xb8   : > { %984 = vmatmul.mubr.f32.vlgmr.msra.gmra.mxu0 %v3809_v3  ;;  %1039 = vmatprep.subr.mxu1 %v3811_v26  ;;  %v3104_v26 = vand.u32 4294901760, %v205_v4  ;;  %v3124_v44 = vand.u32 4294901760, %v206_v18 }
  0xb9   : > { %1095 = vmatprep.subr.mxu0 %v2933_v43  ;;  %1041 = vmatpush1.msra.mxu1 %v3760_v37  ;;  %v3086_v37 = vsub.f32 %v213_v62, %v3046_v23  ;;  %v3655_v62 = vand.u32 4294901760, %v3058_v39  ;;  %3815 = vst [vmem:[#allocation27_spill] sm:$0xff] %v3113_v13  ;;  %v3138_v5 = vsub.f32 %v3044_v56, %v3654_v28  ;;  %v197_v28 = vld [vmem:[#allocation5 + $0xb0] sm:$0xff] }
  0xba   : > { %1097 = vmatpush1.msra.mxu0 %v2935_v16  ;;  %1043 = vmatprep.subr.mxu1 %v3762_v55  ;;  %v3101_v55 = vsub.f32 %v3006_v46, %v3650_v40  ;;  %3814 = vst [vmem:[#allocation26_spill] sm:$0xff] %v3104_v26  ;;  %v3660_v40 = vand.u32 4294901760, %v3052_v9  ;;  %3816 = vst [vmem:[#allocation28_spill] sm:$0xff] %v3124_v44  ;;  %v3151_v57 = vsub.f32 %v205_v4, %v3104_v26 }
  0xbb   : > { %1099 = vmatprep.subr.mxu0 %v2954_v50  ;;  %1045 = vmatpush1.msra.mxu1 %v3764_v1  ;;  %v1218_v1 = vand.u32 4294901760, %v3067_v54  ;;  %v3127_v54 = vsub.f32 %v210_v61, %v3080_v33  ;;  %v3148_v61 = vsub.f32 %v3058_v39, %v3655_v62  ;;  %v1260_v62 = vand.u32 4294901760, %v3138_v5 }
  0xbc   : > { %1101 = vmatpush1.msra.mxu0 %v2940_v58  ;;  %1047 = vmatprep.subr.mxu1 %v3766_v20  ;;  %v3122_v20 = vsub.f32 %v3038_v17, %v3653_v10  ;;  %v3140_v10 = vand.u32 4294901760, %v202_v8  ;;  %v3167_v4 = vsub.f32 %v3052_v9, %v3660_v40  ;;  %v3821_v40 = vand.u32 4294901760, %v3023_v7 }
  0xbd   : > { %1103 = vmatprep.subr.mxu0 %v2965_v51  ;;  %1049 = vmatpush1.msra.mxu1 %v2689_v42  ;;  %3817 = vst [vmem:[#allocation32_spill] sm:$0xff] %v3127_v54  ;;  %v1236_v42 = vand.u32 4294901760, %v3091_v22  ;;  %v194_v22 = vld [vmem:[#allocation5 + $0x98] sm:$0xff]  ;;  %v3825_v5 = vand.u32 4294901760, %v3034_v12 }
  0xbe   : > { %1105 = vmatpush1.msra.mxu0 %v2970_v21  ;;  %1051 = vmatprep.subr.mxu1 %v2703_v29  ;;  %3819 = vst [vmem:[#allocation22_spill] sm:$0xff] %v3140_v10  ;;  %v1248_v29 = vand.u32 4294901760, %v3101_v55  ;;  %v3162_v55 = vsub.f32 %v201_v11, %v3113_v13  ;;  %v1242_v32 = vand.u32 4294901760, %v3122_v20  ;;  %v3176_v11 = vsub.f32 %v206_v18, %v3124_v44  ;;  %v185_v21 = vld [vmem:[#allocation5 + $0x50] sm:$0xff] }
  0xbf   : > { %1107 = vmatprep.subr.mxu0 %v2988_v45  ;;  %1053 = vmatpush1.msra.mxu1 %v2720_v31  ;;  %v3159_v31 = vsub.f32 %v3070_v35, %v3657_v30  ;;  %v3182_v45 = vand.u32 4294901760, %v197_v28  ;;  %v1254_v18 = vand.u32 4294901760, %v3148_v61  ;;  %v3824_v30 = vand.u32 4294901760, %v3107_v53 }
  0xc0   : > { %1086 = vmatprep.mubr.f32.mxu1 %v3746_v34  ;;  %1109 = vmatpush1.msra.mxu0 %v2975_v0  ;;  %v189_v0 = vld [vmem:[#allocation5 + $0x70] sm:$0xff]  ;;  %v3194_v7 = vand.u32 4294901760, %v194_v22  ;;  %v3826_v61 = vand.u32 4294901760, %v3086_v37 }
  0xc1   : > { %1088 = vmatmul.mubr.f32.vlgmr.msra.gmra.mxu1 %v3809_v3  ;;  %1111 = vmatprep.subr.mxu0 %v3008_v60  ;;  %3822 = vst [vmem:[#allocation23_spill] sm:$0xff] %v3182_v45  ;;  %v190_v60 = vld [vmem:[#allocation5 + $0x78] sm:$0xff]  ;;  %v1266_v20 = vand.u32 4294901760, %v3159_v31 }
  0xc2   : > { %1207 = vmatprep.subr.mxu1 %v1206_v36  ;;  %1113 = vmatpush1.msra.mxu0 %v3000_v48  ;;  %v3184_v36 = vand.u32 4294901760, %v193_v49  ;;  %v3192_v48 = vsub.f32 %v3107_v53, %v3824_v30  ;;  %v3209_v30 = vand.u32 4294901760, %v189_v0 }
  0xc3   : > { %1213 = vmatpush1.msra.mxu1 %v3821_v40  ;;  %1115 = vmatprep.subr.mxu0 %v3025_v6  ;;  %v3197_v40 = vsub.f32 %v202_v8, %v3140_v10  ;;  %v3207_v6 = vsub.f32 %v3086_v37, %v3826_v61  ;;  %v3827_v8 = vand.u32 4294901760, %v3127_v54  ;;  %v3225_v61 = vsub.f32 %v197_v28, %v3182_v45  ;;  %v182_v28 = vld [vmem:[#allocation5 + $0x38] sm:$0xff] }
  0xc4   : > { %3823 = vst [vmem:[#allocation24_spill] sm:$0xff] %v3184_v36  ;;  %1219 = vmatprep.subr.mxu1 %v1218_v1  ;;  %1117 = vmatpush1.msra.mxu0 %v3010_v2  ;;  %v1272_v1 = vand.u32 4294901760, %v3167_v4  ;;  %v186_v4 = vld [vmem:[#allocation5 + $0x58] sm:$0xff]  ;;  %v3221_v2 = vsub.f32 %v198_v15, %v3172_v14  ;;  %v1278_v15 = vand.u32 4294901760, %v3192_v48  ;;  %v181_v48 = vld [vmem:[#allocation5 + $0x30] sm:$0xff] }
  0xc5   : > { %1225 = vmatpush1.msra.mxu1 %v3825_v5  ;;  %1119 = vmatprep.subr.mxu0 %v3054_v52  ;;  %v3215_v12 = vsub.f32 %v3127_v54, %v3827_v8  ;;  %v3217_v5 = vand.u32 4294901760, %v190_v60  ;;  %v3829_v8 = vand.u32 4294901760, %v3133_v19  ;;  %v3247_v54 = vand.u32 4294901760, %v186_v4 }
  0xc6   : > { %1231 = vmatprep.subr.mxu1 %v1230_v27  ;;  %1121 = vmatpush1.msra.mxu0 %v3046_v23  ;;  %v3228_v27 = vsub.f32 %v193_v49, %v3184_v36  ;;  %v3240_v23 = vsub.f32 %v194_v22, %v3194_v7  ;;  %v1284_v49 = vand.u32 4294901760, %v3207_v6  ;;  %v3830_v22 = vand.u32 4294901760, %v3176_v11  ;;  %v178_v6 = vld [vmem:[#allocation5 + $0x18] sm:$0xff] }
  0xc7   : > { %1237 = vmatpush1.msra.mxu1 %v1236_v42  ;;  %v1295_v52 = vsub.f32 %v3133_v19, %v3829_v8  ;;  %1123 = vmatprep.subr.mxu0 %v3080_v33  ;;  %v3237_v42 = vand.u32 4294901760, %v185_v21  ;;  %v3245_v8 = vsub.f32 %v189_v0, %v3209_v30  ;;  %v1290_v31 = vand.u32 4294901760, %v3215_v12  ;;  %v177_v19 = vld [vmem:[#allocation5 + $0x10] sm:$0xff] }
  0xc8   : > { %3828 = vst [vmem:[#allocation35_spill] sm:$0xff] %v3228_v27  ;;  %1243 = vmatprep.subr.mxu1 %v1242_v32  ;;  %1125 = vmatpush1.msra.mxu0 %v3093_v59  ;;  %v1301_v59 = vsub.f32 %v3176_v11, %v3830_v22  ;;  %v3257_v0 = vsub.f32 %v190_v60, %v3217_v5  ;;  %v3831_v33 = vand.u32 4294901760, %v3151_v57  ;;  %v3832_v22 = vand.u32 4294901760, %v3197_v40 }
  0xc9   : > { %1249 = vmatpush1.msra.mxu1 %v1248_v29  ;;  %1127 = vmatprep.subr.mxu0 %v3124_v44  ;;  %v1296_v32 = vand.u32 4294901760, %v1295_v52  ;;  %v3263_v44 = vand.u32 4294901760, %v182_v28  ;;  %v3271_v29 = vsub.f32 %v185_v21, %v3237_v42  ;;  %v3273_v52 = vand.u32 4294901760, %v181_v48 }
  0xca   : > { %1255 = vmatprep.subr.mxu1 %v1254_v18  ;;  %1129 = vmatpush1.msra.mxu0 %v3104_v26  ;;  %v1307_v18 = vsub.f32 %v3151_v57, %v3831_v33  ;;  %v1313_v60 = vsub.f32 %v3197_v40, %v3832_v22  ;;  %v3834_v33 = vand.u32 4294901760, %v3162_v55  ;;  %v3284_v22 = vsub.f32 %v186_v4, %v3247_v54 }
  0xcb   : > { %1261 = vmatpush1.msra.mxu1 %v1260_v62  ;;  %1131 = vmatprep.subr.mxu0 %v3140_v10  ;;  %3833 = vst [vmem:[#allocation36_spill] sm:$0xff] %v3271_v29  ;;  %v3280_v10 = vand.u32 4294901760, %v178_v6  ;;  %v1302_v21 = vand.u32 4294901760, %v1301_v59  ;;  %v3835_v62 = vand.u32 4294901760, %v3221_v2 }
  0xcc   : > { %1267 = vmatprep.subr.mxu1 %v1266_v20  ;;  %1133 = vmatpush1.msra.mxu0 %v3113_v13  ;;  %v1319_v12 = vsub.f32 %v3162_v55, %v3834_v33  ;;  %v1308_v33 = vand.u32 4294901760, %v1307_v18  ;;  %v3836_v20 = vand.u32 4294901760, %v3225_v61  ;;  %v1314_v59 = vand.u32 4294901760, %v1313_v60 }
  0xcd   : > { %1273 = vmatpush1.msra.mxu1 %v1272_v1  ;;  %1135 = vmatprep.subr.mxu0 %v3172_v14  ;;  %v1325_v13 = vsub.f32 %v3221_v2, %v3835_v62  ;;  %v3290_v1 = vand.u32 4294901760, %v177_v19  ;;  %v3298_v14 = vsub.f32 %v182_v28, %v3263_v44  ;;  %v3837_v62 = vand.u32 4294901760, %v3240_v23 }
  0xce   : > { %1279 = vmatprep.subr.mxu1 %v1278_v15  ;;  %1137 = vmatpush1.msra.mxu0 %v3182_v45  ;;  %v1331_v4 = vsub.f32 %v3225_v61, %v3836_v20  ;;  %v3302_v15 = vsub.f32 %v181_v48, %v3273_v52  ;;  %v1320_v18 = vand.u32 4294901760, %v1319_v12  ;;  %v3838_v28 = vand.u32 4294901760, %v3228_v27 }
  0xcf   : > { %1285 = vmatpush1.msra.mxu1 %v1284_v49  ;;  %1139 = vmatprep.subr.mxu0 %v3194_v7  ;;  %v1337_v26 = vsub.f32 %v3240_v23, %v3837_v62  ;;  %v3314_v60 = vsub.f32 %v178_v6, %v3280_v10  ;;  %v1326_v48 = vand.u32 4294901760, %v1325_v13  ;;  %v3318_v62 = vsub.f32 %v177_v19, %v3290_v1 }
  0xd0   : > { %1291 = vmatprep.subr.mxu1 %v1290_v31  ;;  %1141 = vmatpush1.msra.mxu0 %v3184_v36  ;;  %v1343_v20 = vsub.f32 %v3228_v27, %v3838_v28  ;;  %v3840_v49 = vand.u32 4294901760, %v3257_v0  ;;  %v1332_v28 = vand.u32 4294901760, %v1331_v4  ;;  %v3697_v6 = vand.u32 4294901760, %v3298_v14 }
  0xd1   : > { %1297 = vmatpush1.msra.mxu1 %v1296_v32  ;;  %1143 = vmatprep.subr.mxu0 %v3217_v5  ;;  %3839 = vst [vmem:[#allocation37_spill] sm:$0xff] %v3318_v62  ;;  %v3841_v13 = vand.u32 4294901760, %v3245_v8  ;;  %v3842_v12 = vand.u32 4294901760, %v3284_v22  ;;  %v3696_v4 = vand.u32 4294901760, %v3314_v60  ;;  %v3695_v31 = vand.u32 4294901760, %v3318_v62 }
  0xd2   : > { %1303 = vmatprep.subr.mxu1 %v1302_v21  ;;  %v1349_v32 = vsub.f32 %v3257_v0, %v3840_v49  ;;  %1145 = vmatpush1.msra.mxu0 %v3209_v30  ;;  %v1338_v21 = vand.u32 4294901760, %v1337_v26  ;;  %v1344_v49 = vand.u32 4294901760, %v1343_v20 }
  0xd3   : > { %1309 = vmatpush1.msra.mxu1 %v1308_v33  ;;  %1147 = vmatprep.subr.mxu0 %v3247_v54  ;;  %v1355_v19 = vsub.f32 %v3245_v8, %v3841_v13  ;;  %v1361_v33 = vsub.f32 %v3284_v22, %v3842_v12 }
  0xd4   : > { %1315 = vmatprep.subr.mxu1 %v1314_v59  ;;  %1149 = vmatpush1.msra.mxu0 %v3237_v42  ;;  %v1350_v26 = vand.u32 4294901760, %v1349_v32  ;;  %v3843_v59 = vand.u32 4294901760, %v3271_v29 }
  0xd5   : > { %1321 = vmatpush1.msra.mxu1 %v1320_v18  ;;  %1151 = vmatprep.subr.mxu0 %v3263_v44  ;;  %v1373_v18 = vsub.f32 %v3298_v14, %v3697_v6  ;;  %v1356_v20 = vand.u32 4294901760, %v1355_v19  ;;  %v1362_v12 = vand.u32 4294901760, %v1361_v33  ;;  %v3845_v19 = vld [vmem:[#allocation34_spill] sm:$0xff] }
  0xd6   : > { %1327 = vmatprep.subr.mxu1 %v1326_v48  ;;  %v1367_v13 = vsub.f32 %v3271_v29, %v3843_v59  ;;  %1153 = vmatpush1.msra.mxu0 %v3273_v52  ;;  %v3844_v48 = vand.u32 4294901760, %v3302_v15  ;;  %v3861_v6 = vld [vmem:[#allocation22_spill] sm:$0xff] }
  0xd7   : > { %1333 = vmatpush1.msra.mxu1 %v1332_v28  ;;  %1155 = vmatprep.subr.mxu0 %v3280_v10  ;;  %v1385_v28 = vsub.f32 %v3314_v60, %v3696_v4  ;;  %v3860_v4 = vld [vmem:[#allocation26_spill] sm:$0xff] }
  0xd8   : > { %1339 = vmatprep.subr.mxu1 %v1338_v21  ;;  %v1379_v32 = vsub.f32 %v3302_v15, %v3844_v48  ;;  %1157 = vmatpush1.msra.mxu0 %v3290_v1  ;;  %v1368_v59 = vand.u32 4294901760, %v1367_v13  ;;  %v1391_v21 = vsub.f32 %v3318_v62, %v3695_v31  ;;  %v1374_v48 = vand.u32 4294901760, %v1373_v18  ;;  %v3846_v13 = vld [vmem:[#allocation11_spill] sm:$0xff]  ;;  %v3847_v18 = vld [vmem:[#allocation32_spill] sm:$0xff] }
  0xd9   : > { %1345 = vmatpush1.msra.mxu1 %v1344_v49  ;;  %1190 = vmatprep.mubr.f32.mxu0 %v3746_v34  ;;  %v1386_v33 = vand.u32 4294901760, %v1385_v28  ;;  %v3851_v28 = vld [vmem:[#allocation15_spill] sm:$0xff]  ;;  %v3859_v31 = vld [vmem:[#allocation28_spill] sm:$0xff] }
  0xda   : > { %1351 = vmatprep.subr.mxu1 %v1350_v26  ;;  %1436 = vmatprep.subr.mxu0 %v2957_v63  ;;  %v1380_v49 = vand.u32 4294901760, %v1379_v32  ;;  %v1392_v26 = vand.u32 4294901760, %v1391_v21  ;;  %v3849_v32 = vld [vmem:[#allocation21_spill] sm:$0xff] }
  0xdb   : > { %1196 = vmatmul.mubr.f32.vlgmr.msra.gmra.mxu0 %v3845_v19  ;;  %1357 = vmatpush1.msra.mxu1 %v1356_v20  ;;  %v3848_v20 = vld [vmem:[#allocation13_spill] sm:$0xff]  ;;  %v3854_v19 = vld [vmem:[#allocation16_spill] sm:$0xff] }
  0xdc   : > { %1439 = vmatpush1.msra.mxu0 %v2952_v25  ;;  %1363 = vmatprep.subr.mxu1 %v1362_v12  ;;  %v3850_v12 = vld [vmem:[#allocation12_spill] sm:$0xff]  ;;  %v3853_v21 = vld [vmem:[#allocation17_spill] sm:$0xff] }
  0xdd   : > { %1442 = vmatprep.subr.mxu0 %v2983_v24  ;;  %1369 = vmatpush1.msra.mxu1 %v1368_v59  ;;  %v3852_v59 = vld [vmem:[#allocation14_spill] sm:$0xff] }
  0xde   : > { %1445 = vmatpush1.msra.mxu0 %v2963_v47  ;;  %1375 = vmatprep.subr.mxu1 %v1374_v48  ;;  %v3855_v48 = vld [vmem:[#allocation19_spill] sm:$0xff] }
  0xdf   : > { %1448 = vmatprep.subr.mxu0 %v2992_v38  ;;  %1381 = vmatpush1.msra.mxu1 %v1380_v49  ;;  %v3856_v49 = vld [vmem:[#allocation18_spill] sm:$0xff] }
  0xe0   : > { %1451 = vmatpush1.msra.mxu0 %v2998_v41  ;;  %1387 = vmatprep.subr.mxu1 %v1386_v33  ;;  %v3857_v33 = vld [vmem:[#allocation20_spill] sm:$0xff] }
  0xe1   : > { %1454 = vmatprep.subr.mxu0 %v3038_v17  ;;  %1393 = vmatpush1.msra.mxu1 %v1392_v26  ;;  %v3858_v26 = vld [vmem:[#allocation25_spill] sm:$0xff] }
  0xe2   : > { %1426 = vmatprep.mubr.f32.mxu1 %v3746_v34  ;;  %1457 = vmatpush1.msra.mxu0 %v3006_v46 }
  0xe3   : > { %1428 = vmatmul.mubr.f32.vlgmr.msra.gmra.mxu1 %v3809_v3  ;;  %1460 = vmatprep.subr.mxu0 %v3058_v39  ;;  %v3862_v3 = vld [vmem:[#allocation27_spill] sm:$0xff] }
  0xe4   : > { %1572 = vmatprep.subr.mxu1 %v2933_v43  ;;  %1463 = vmatpush1.msra.mxu0 %v3044_v56 }
  0xe5   : > { %1574 = vmatpush1.msra.mxu1 %v2935_v16  ;;  %1466 = vmatprep.subr.mxu0 %v3070_v35 }
  0xe6   : > { %1576 = vmatprep.subr.mxu1 %v2954_v50  ;;  %1469 = vmatpush1.msra.mxu0 %v3052_v9 }
  0xe7   : > { %1578 = vmatpush1.msra.mxu1 %v2940_v58  ;;  %1472 = vmatprep.subr.mxu0 %v3107_v53 }
  0xe8   : > { %1580 = vmatprep.subr.mxu1 %v2965_v51  ;;  %1475 = vmatpush1.msra.mxu0 %v3086_v37 }
  0xe9   : > { %1582 = vmatpush1.msra.mxu1 %v3846_v13  ;;  %1478 = vmatprep.subr.mxu0 %v3847_v18 }
  0xea   : > { %1584 = vmatprep.subr.mxu1 %v3848_v20  ;;  %1481 = vmatpush1.msra.mxu0 %v3849_v32 }
  0xeb   : > { %1586 = vmatpush1.msra.mxu1 %v3850_v12  ;;  %1484 = vmatprep.subr.mxu0 %v3176_v11 }
  0xec   : > { %1588 = vmatprep.subr.mxu1 %v3851_v28  ;;  %1487 = vmatpush1.msra.mxu0 %v3151_v57 }
  0xed   : > { %1590 = vmatpush1.msra.mxu1 %v3852_v59  ;;  %1490 = vmatprep.subr.mxu0 %v3197_v40 }
  0xee   : > { %1592 = vmatprep.subr.mxu1 %v3853_v21  ;;  %1493 = vmatpush1.msra.mxu0 %v3162_v55 }
  0xef   : > { %1594 = vmatpush1.msra.mxu1 %v3854_v19  ;;  %1496 = vmatprep.subr.mxu0 %v3221_v2 }
  0xf0   : > { %1596 = vmatprep.subr.mxu1 %v3855_v48  ;;  %1499 = vmatpush1.msra.mxu0 %v3225_v61 }
  0xf1   : > { %1598 = vmatpush1.msra.mxu1 %v3856_v49  ;;  %1502 = vmatprep.subr.mxu0 %v3240_v23 }
  0xf2   : > { %1600 = vmatprep.subr.mxu1 %v3857_v33  ;;  %1505 = vmatpush1.msra.mxu0 %v3228_v27  ;;  %v3863_v27 = vld [vmem:[#allocation33_spill] sm:$0xff] }
  0xf3   : > { %1602 = vmatpush1.msra.mxu1 %v3858_v26  ;;  %1508 = vmatprep.subr.mxu0 %v3257_v0 }
  0xf4   : > { %1604 = vmatprep.subr.mxu1 %v3859_v31  ;;  %1511 = vmatpush1.msra.mxu0 %v3245_v8 }
  0xf5   : > { %1606 = vmatpush1.msra.mxu1 %v3860_v4  ;;  %1514 = vmatprep.subr.mxu0 %v3284_v22 }
  0xf6   : > { %1608 = vmatprep.subr.mxu1 %v3861_v6  ;;  %1517 = vmatpush1.msra.mxu0 %v3271_v29  ;;  %v3864_v29 = vld [vmem:[#allocation30_spill] sm:$0xff] }
  0xf7   : > { %1610 = vmatpush1.msra.mxu1 %v3862_v3  ;;  %1520 = vmatprep.subr.mxu0 %v3298_v14 }
  0xf8   : > { %1612 = vmatprep.subr.mxu1 %v3863_v27  ;;  %1523 = vmatpush1.msra.mxu0 %v3302_v15  ;;  %v3865_v27 = vand.u32 4294901760, %v2957_v63  ;;  %v3869_v63 = vand.u32 4294901760, %v2992_v38  ;;  %v3874_v38 = vand.u32 4294901760, %v3058_v39  ;;  %v3878_v39 = vand.u32 4294901760, %v3107_v53 }
  0xf9   : > { %1614 = vmatpush1.msra.mxu1 %v3182_v45  ;;  %1526 = vmatprep.subr.mxu0 %v3314_v60  ;;  %v3866_v45 = vand.u32 4294901760, %v2952_v25  ;;  %v3870_v25 = vand.u32 4294901760, %v2998_v41  ;;  %v3875_v41 = vand.u32 4294901760, %v3044_v56  ;;  %v3884_v53 = vand.u32 4294901760, %v3197_v40 }
  0xfa   : > { %1616 = vmatprep.subr.mxu1 %v3194_v7  ;;  %1529 = vmatpush1.msra.mxu0 %v3318_v62  ;;  %v3867_v62 = vand.u32 4294901760, %v2983_v24  ;;  %v3871_v24 = vand.u32 4294901760, %v3038_v17  ;;  %v3876_v17 = vand.u32 4294901760, %v3070_v35  ;;  %v3885_v56 = vand.u32 4294901760, %v3162_v55 }
  0xfb   : > { %1562 = vmatprep.mubr.f32.mxu0 %v3746_v34  ;;  %1618 = vmatpush1.msra.mxu1 %v3184_v36  ;;  %v3868_v36 = vand.u32 4294901760, %v2963_v47  ;;  %v3872_v47 = vand.u32 4294901760, %v3006_v46  ;;  %v3877_v46 = vand.u32 4294901760, %v3052_v9  ;;  %v3886_v9 = vand.u32 4294901760, %v3221_v2 }
  0xfc   : > { %1565 = vmatmul.mubr.f32.vlgmr.msra.gmra.mxu0 %v3864_v29  ;;  %1620 = vmatprep.subr.mxu1 %v3217_v5  ;;  %v3887_v35 = vand.u32 4294901760, %v3225_v61  ;;  %v3891_v2 = vand.u32 4294901760, %v3257_v0  ;;  %v3896_v61 = vand.u32 4294901760, %v3298_v14  ;;  %v3899_v29 = vld [vmem:[#allocation23_spill] sm:$0xff]  ;;  %v3900_v0 = vand.u32 4294901760, %v3314_v60  ;;  %v3904_v14 = vld [vmem:[#allocation29_spill] sm:$0xff] }
  0xfd   : > { %1680 = vmatprep.subr.mxu0 %v3865_v27  ;;  %1622 = vmatpush1.msra.mxu1 %v3209_v30  ;;  %v3897_v27 = vld [vmem:[#allocation33_spill] sm:$0xff] }
  0xfe   : > { %1684 = vmatpush1.msra.mxu0 %v3866_v45  ;;  %1624 = vmatprep.subr.mxu1 %v3247_v54  ;;  %v3873_v45 = vld [vmem:[#allocation31_spill] sm:$0xff] }
  0xff   : > { %1688 = vmatprep.subr.mxu0 %v3867_v62  ;;  %1626 = vmatpush1.msra.mxu1 %v3237_v42 }
 0x100   : > { %1692 = vmatpush1.msra.mxu0 %v3868_v36  ;;  %1628 = vmatprep.subr.mxu1 %v3263_v44  ;;  %v3894_v36 = vld [vmem:[#allocation36_spill] sm:$0xff] }
 0x101   : > { %1696 = vmatprep.subr.mxu0 %v3869_v63  ;;  %1630 = vmatpush1.msra.mxu1 %v3273_v52  ;;  %v3895_v40 = vand.u32 4294901760, %v3894_v36 }
 0x102   : > { %1700 = vmatpush1.msra.mxu0 %v3870_v25  ;;  %1632 = vmatprep.subr.mxu1 %v3280_v10 }
 0x103   : > { %1704 = vmatprep.subr.mxu0 %v3871_v24  ;;  %1634 = vmatpush1.msra.mxu1 %v3290_v1 }
 0x104   : > { %1667 = vmatprep.mubr.f32.mxu1 %v3746_v34  ;;  %1708 = vmatpush1.msra.mxu0 %v3872_v47 }
 0x105   : > { %1671 = vmatmul.mubr.f32.vlgmr.msra.gmra.mxu1 %v3873_v45  ;;  %1712 = vmatprep.subr.mxu0 %v3874_v38 }
 0x106   : > { %1846 = vmatprep.subr.mxu1 %v2933_v43  ;;  %1716 = vmatpush1.msra.mxu0 %v3875_v41  ;;  %v3879_v43 = vand.u32 4294901760, %v3086_v37  ;;  %v3888_v37 = vand.u32 4294901760, %v3240_v23  ;;  %v3893_v23 = vand.u32 4294901760, %v3284_v22  ;;  %v3901_v22 = vld [vmem:[#allocation37_spill] sm:$0xff] }
 0x107   : > { %1848 = vmatpush1.msra.mxu1 %v2935_v16  ;;  %1720 = vmatprep.subr.mxu0 %v3876_v17  ;;  %v3880_v16 = vand.u32 4294901760, %v3847_v18 }
 0x108   : > { %1850 = vmatprep.subr.mxu1 %v2954_v50  ;;  %1724 = vmatpush1.msra.mxu0 %v3877_v46  ;;  %v3881_v50 = vand.u32 4294901760, %v3849_v32 }
 0x109   : > { %1852 = vmatpush1.msra.mxu1 %v2940_v58  ;;  %1728 = vmatprep.subr.mxu0 %v3878_v39  ;;  %v3882_v58 = vand.u32 4294901760, %v3176_v11  ;;  %v3892_v11 = vand.u32 4294901760, %v3245_v8  ;;  %v3898_v8 = vand.u32 4294901760, %v3302_v15 }
 0x10a   : > { %1854 = vmatprep.subr.mxu1 %v2965_v51  ;;  %1732 = vmatpush1.msra.mxu0 %v3879_v43  ;;  %v3883_v51 = vand.u32 4294901760, %v3151_v57  ;;  %v3889_v57 = vld [vmem:[#allocation35_spill] sm:$0xff] }
 0x10b   : > { %1856 = vmatpush1.msra.mxu1 %v3846_v13  ;;  %1736 = vmatprep.subr.mxu0 %v3880_v16  ;;  %v3890_v55 = vand.u32 4294901760, %v3889_v57 }
 0x10c   : > { %1858 = vmatprep.subr.mxu1 %v3848_v20  ;;  %1740 = vmatpush1.msra.mxu0 %v3881_v50 }
 0x10d   : > { %1860 = vmatpush1.msra.mxu1 %v3850_v12  ;;  %1744 = vmatprep.subr.mxu0 %v3882_v58 }
 0x10e   : > { %1862 = vmatprep.subr.mxu1 %v3851_v28  ;;  %1748 = vmatpush1.msra.mxu0 %v3883_v51 }
 0x10f   : > { %1864 = vmatpush1.msra.mxu1 %v3852_v59  ;;  %1752 = vmatprep.subr.mxu0 %v3884_v53 }
 0x110   : > { %1866 = vmatprep.subr.mxu1 %v3853_v21  ;;  %1756 = vmatpush1.msra.mxu0 %v3885_v56 }
 0x111   : > { %1868 = vmatpush1.msra.mxu1 %v3854_v19  ;;  %1760 = vmatprep.subr.mxu0 %v3886_v9 }
 0x112   : > { %1870 = vmatprep.subr.mxu1 %v3855_v48  ;;  %1764 = vmatpush1.msra.mxu0 %v3887_v35 }
 0x113   : > { %1872 = vmatpush1.msra.mxu1 %v3856_v49  ;;  %1768 = vmatprep.subr.mxu0 %v3888_v37 }
 0x114   : > { %1874 = vmatprep.subr.mxu1 %v3857_v33  ;;  %1772 = vmatpush1.msra.mxu0 %v3890_v55 }
 0x115   : > { %1876 = vmatpush1.msra.mxu1 %v3858_v26  ;;  %1776 = vmatprep.subr.mxu0 %v3891_v2 }
 0x116   : > { %1878 = vmatprep.subr.mxu1 %v3859_v31  ;;  %1780 = vmatpush1.msra.mxu0 %v3892_v11  ;;  %v3902_v31 = vand.u32 4294901760, %v3901_v22 }
 0x117   : > { %1880 = vmatpush1.msra.mxu1 %v3860_v4  ;;  %1784 = vmatprep.subr.mxu0 %v3893_v23 }
 0x118   : > { %1882 = vmatprep.subr.mxu1 %v3861_v6  ;;  %1788 = vmatpush1.msra.mxu0 %v3895_v40 }
 0x119   : > { %1884 = vmatpush1.msra.mxu1 %v3862_v3  ;;  %1792 = vmatprep.subr.mxu0 %v3896_v61  ;;  %v3903_v3 = vld [vmem:[#allocation24_spill] sm:$0xff] }
 0x11a   : > { %1886 = vmatprep.subr.mxu1 %v3897_v27  ;;  %1796 = vmatpush1.msra.mxu0 %v3898_v8 }
 0x11b   : > { %1888 = vmatpush1.msra.mxu1 %v3899_v29  ;;  %1800 = vmatprep.subr.mxu0 %v3900_v0 }
 0x11c   : > { %1890 = vmatprep.subr.mxu1 %v3194_v7  ;;  %1804 = vmatpush1.msra.mxu0 %v3902_v31 }
 0x11d   : > { %1837 = vmatprep.mubr.f32.mxu0 %v3746_v34  ;;  %1892 = vmatpush1.msra.mxu1 %v3903_v3 }
 0x11e   : > { %1839 = vmatmul.mubr.f32.vlgmr.msra.gmra.mxu0 %v3904_v14  ;;  %1894 = vmatprep.subr.mxu1 %v3217_v5 }
 0x11f   : > { %1941 = vmatprep.mubr.f32.mxu1 %v3746_v34  ;;  %1896 = vmatpush1.msra.mxu1 %v3209_v30 }
 0x120   : > { %1898 = vmatprep.subr.mxu1 %v3247_v54 }
 0x121   : > { %1900 = vmatpush1.msra.mxu1 %v3237_v42 }
 0x122   : > { %1902 = vmatprep.subr.mxu1 %v3263_v44 }
 0x123   : > { %1904 = vmatpush1.msra.mxu1 %v3273_v52 }
 0x124   : > { %1906 = vmatprep.subr.mxu1 %v3280_v10 }
 0x125   : > { %1908 = vmatpush1.msra.mxu1 %v3290_v1 }
 0x126   : > { %1943 = vmatmul.mubr.f32.vlgmr.msra.gmra.mxu1 %v3904_v14 }
 0x136   : > { %v342_v7 = vpop.f32.mrf.mxu0 }
 0x138   : > { %v344_v5 = vpop.f32.mrf.mxu0 }
 0x13d   : > { %v574_v34 = vpop.f32.mrf.mxu1 }
 0x13e   : > { %v575_v62 = vadd.f32 %v574_v34, %v342_v7 }
 0x13f   : > { %v576_v30 = vpop.f32.mrf.mxu1 }
 0x140   : > { %v577_v6 = vadd.f32 %v576_v30, %v344_v5 }
 0x156   : > { %v711_v15 = vpop.f32.mrf.mxu0 }
 0x157   : > { %v712_v44 = vadd.f32 %v711_v15, %v575_v62 }
 0x158   : > { %v713_v60 = vpop.f32.mrf.mxu0 }
 0x159   : > { %v714_v52 = vadd.f32 %v713_v60, %v577_v6 }
 0x15f   : > { %v817_v54 = vpop.f32.mrf.mxu1 }
 0x160   : > { %v818_v13 = vadd.f32 %v817_v54, %v712_v44 }
 0x161   : > { %v819_v4 = vpop.f32.mrf.mxu1 }
 0x162   : > { %v820_v1 = vadd.f32 %v819_v4, %v714_v52 }
 0x178   : > { %v985_v42 = vpop.f32.mrf.mxu0 }
 0x179   : > { %v986_v18 = vadd.f32 %v985_v42, %v818_v13 }
 0x17a   : > { %v987_v10 = vpop.f32.mrf.mxu0 }
 0x17b   : > { %v988_v32 = vadd.f32 %v987_v10, %v820_v1 }
 0x181   : > { %v1089_v20 = vpop.f32.mrf.mxu1 }
 0x182   : > { %v1090_v12 = vadd.f32 %v1089_v20, %v986_v18 }
 0x183   : > { %v1091_v28 = vpop.f32.mrf.mxu1 }
 0x184   : > { %1949 = vst [vmem:[%s3529_s17] sm:$0xff] %v1090_v12  ;;  %v1092_v59 = vadd.f32 %v1091_v28, %v988_v32 }
 0x186   : > { %1950 = vst [vmem:[%s3529_s17 + $0x8] sm:$0xff] %v1092_v59 }
 0x19b   : > { %v1197_v21 = vpop.f32.mrf.mxu0 }
 0x19d   : > { %v1199_v19 = vpop.f32.mrf.mxu0 }
 0x1a3   : > { %v1429_v48 = vpop.f32.mrf.mxu1 }
 0x1a4   : > { %v1430_v25 = vadd.f32 %v1429_v48, %v1197_v21 }
 0x1a5   : > { %v1431_v33 = vpop.f32.mrf.mxu1 }
 0x1a6   : > { %v1432_v47 = vadd.f32 %v1431_v33, %v1199_v19 }
 0x1bc   : > { %v1566_v49 = vpop.f32.mrf.mxu0 }
 0x1bd   : > { %v1567_v45 = vadd.f32 %v1566_v49, %v1430_v25 }
 0x1be   : > { %v1568_v26 = vpop.f32.mrf.mxu0 }
 0x1bf   : > { %v1569_v41 = vadd.f32 %v1568_v26, %v1432_v47 }
 0x1c5   : > { %v1672_v63 = vpop.f32.mrf.mxu1 }
 0x1c6   : > { %v1673_v17 = vadd.f32 %v1672_v63, %v1567_v45 }
 0x1c7   : > { %v1674_v38 = vpop.f32.mrf.mxu1 }
 0x1c8   : > { %v1675_v39 = vadd.f32 %v1674_v38, %v1569_v41 }
 0x1de   : > { %v1840_v24 = vpop.f32.mrf.mxu0 }
 0x1df   : > { %v1841_v43 = vadd.f32 %v1840_v24, %v1673_v17 }
 0x1e0   : > { %v1842_v46 = vpop.f32.mrf.mxu0 }
 0x1e1   : > { %v1843_v50 = vadd.f32 %v1842_v46, %v1675_v39 }
 0x1e6   : > { %v1944_v16 = vpop.f32.mrf.mxu1 }
 0x1e7   : > { %v1945_v58 = vadd.f32 %v1944_v16, %v1841_v43 }
 0x1e8   : > { %v1946_v51 = vpop.f32.mrf.mxu1 }
 0x1e9   : > { %1951 = vst [vmem:[%s3529_s17 + $0x10] sm:$0xff] %v1945_v58  ;;  %v1947_v53 = vadd.f32 %v1946_v51, %v1843_v50 }
 0x1eb   : > { %1952 = vst [vmem:[%s3529_s17 + $0x18] sm:$0xff] %v1947_v53 }
 0x1ec   : > { %2191 = shalt.err (!%p2188_p0)
}
 0x1ed   : > { %s2192_s28 = scalar_lea.hbm %s1966_s23, 512  ;;  %s2196_s5 = scalar_lea.hbm %s3573_s2, 1024 }
 0x1ee   : > { %p2193_p5 = scmp.ne.s32.totalorder %s1966_s23, %s2192_s28  ;;  %p2197_p1 = scmp.lt.s32.totalorder %s1966_s23, %s3573_s2 }
 0x1ef   : > { %p2198_p4 = scmp.lt.s32.totalorder %s2196_s5, %s2192_s28 }
 0x1f0   : > { %p2194_p9 = pnand %p2193_p5, %p3905_p3 }
 0x1f1   : > { %p2199_p6 = por %p2198_p4, %p2197_p1 }
 0x1f2   : > { %p2195_p12 = pneg %p2194_p9 }
 0x1f4   : > { %p2200_p8 = pnand %p2199_p6, %p2195_p12 }
 0x1f6   : > { %2203 = shalt.err (!%p2200_p8)
}
 0x1f7   : > { %2070 = dma.vmem_to_hbm [thread:$0]  (%p3905_p3), %s1969_s18, 512, %s1966_s23, %s1954_s24  }
 0x1f8 PF: > { %s1980_s14 = sand.u32 1, %s2234_s9   ;;  %p3906_p11 = scmp.ne.s32.totalorder %s3705_s16, 0 }
 0x1f9   : > { %p3907_p7 = scmp.ge.s32.totalorder %s2246_s12, 2  ;;  %s1981_s22 = scalar_lea.sflag [#allocation4], %s1980_s14 }
 0x1fb   : > { %p2081_p10 = pnand %p3907_p7, %p3906_p11 }
 0x1fd   : > { %p2082_p2 = pneg %p2081_p10 }
 0x1ff   : > { %2229 = dma.done.wait (%p2082_p2), %s1981_s22, 512  }
 0x200   : > { %2231 = vsyncadd (%p2082_p2), %s1981_s22, 4294966784  ;;  %p16_p13 = scmp.ge.s32.totalorder %s2323_s21, 4   ;;  %s3908_s9 = smov %s2238_s10 }
 0x201   : > { %s3909_s10 = smov %s2242_s11  ;;  %s3910_s11 = smov %s2340_s29 }
 0x202   : > { %s3911_s12 = smov %s2323_s21  ;;  %18 = sbr.rel (!%p16_p13) target bundleno = 6 (0x6), region = 77 }
 0x207   :  { %1986 = vsyncpa [#allocation3], 1 }
 0x208   :  { %1988 = vsyncpa [#allocation3 + $0x1], 1 }
 0x209   :  { %1989 = vsyncpa [#allocation6], 1 }
 0x20a   :  { %1990 = vsyncpa [#allocation4], 1 }
 0x20b   :  { %1992 = vsyncpa [#allocation4 + $0x1], 1 }

</bundles_post_ra>
